<compile_context>
chip_gen: v7x
topology: tpu7x:2x2x1
jax: 0.10.0
libtpu: 0.0.40
codegen_flags: <defaults>
</compile_context>

<pallas_src>
import math

import numpy as np
import jax
import jax.numpy as jnp
from jax.experimental import pallas as pl
from jax.experimental.pallas import tpu as pltpu


EPS = 1e-5          # torch BatchNorm default eps
K = 5               # kernel size used everywhere in the module
STRIDE = 2
PAD = 2
OUT_PAD = 1


# ---------------------------------------------------------------------------
# Host-side (setup-time) constant construction
# ---------------------------------------------------------------------------
def _decoder_geometry(cfg):
    L = cfg["num_conv_layers"]
    widths = [2]
    chans = [cfg["input_channels"]]
    for _ in range(L):
        widths.append((widths[-1] - 1) * STRIDE - 2 * PAD + (K - 1) + OUT_PAD + 1)
        chans.append(chans[-1] // 2)
    final_pad = math.floor((STRIDE * cfg["input_image_width"] - 1 - widths[-1] + K) / 2)
    out_w = (widths[-1] + 2 * final_pad - K) // STRIDE + 1
    if out_w < 1:
        raise ValueError("configuration yields an empty final conv output")
    return widths, chans, final_pad, out_w


def _tconv_layer_matrix(w, win, wout):
    """(cin*win^2, cout*wout^2) matrix Mt with y_vec = x_vec @ Mt equal to
    ConvTranspose2d(k=5, s=2, p=2, output_padding=1, bias=False) per sample."""
    cin, cout = w.shape[0], w.shape[1]
    m = np.zeros((cin * win * win, cout * wout * wout), np.float32)
    mv = m.reshape(cin, win * win, cout, wout * wout)
    for iy in range(win):
        for ix in range(win):
            i = iy * win + ix
            for ky in range(K):
                oy = iy * STRIDE - PAD + ky
                if not 0 <= oy < wout:
                    continue
                for kx in range(K):
                    ox = ix * STRIDE - PAD + kx
                    if not 0 <= ox < wout:
                        continue
                    mv[:, i, :, oy * wout + ox] += w[:, :, ky, kx]
    return m


def _conv_layer_matrix(w, win, wout, pad):
    """(cin*win^2, cout*wout^2) matrix for the final strided Conv2d (no bias)."""
    cout, cin = w.shape[0], w.shape[1]
    m = np.zeros((cin * win * win, cout * wout * wout), np.float32)
    mv = m.reshape(cin, win * win, cout, wout * wout)
    for oy in range(wout):
        for ox in range(wout):
            o = oy * wout + ox
            for ky in range(K):
                iy = oy * STRIDE - pad + ky
                if not 0 <= iy < win:
                    continue
                for kx in range(K):
                    ix = ox * STRIDE - pad + kx
                    if not 0 <= ix < win:
                        continue
                    mv[:, iy * win + ix, :, o] += w[:, :, ky, kx].T
    return m


def _channel_reduce_matrices(cout, spatial):
    """R (cout*spatial, cout) sums each channel's lane block; Rt broadcasts back."""
    r = np.zeros((cout * spatial, cout), np.float32)
    rv = r.reshape(cout, spatial, cout)
    for c in range(cout):
        rv[c, :, c] = 1.0
    return r, np.ascontiguousarray(r.T)


def _build_decoder_operands(params, cfg, batch):
    L = cfg["num_conv_layers"]
    widths, chans, final_pad, out_w = _decoder_geometry(cfg)

    ops = []
    # fc: Linear(bias=False) -> pass W^T so the kernel computes z @ W^T
    fc_w = np.asarray(params["fc_w"], np.float32)                 # (feat, latent)
    ops.append(jnp.asarray(fc_w.T.copy()))                        # (latent, feat)
    ops.append(jnp.asarray(np.stack(
        [np.asarray(params["fc_gamma"], np.float32),
         np.asarray(params["fc_beta"], np.float32)], axis=0)))    # (2, feat)

    spatials = []
    for li in range(L):
        cout = chans[li + 1]
        win, wout = widths[li], widths[li + 1]
        w = np.asarray(params["conv"][li]["w"], np.float32)       # (cin, cout, K, K)
        mt = _tconv_layer_matrix(w, win, wout)
        r, rt = _channel_reduce_matrices(cout, wout * wout)
        gb = np.stack([np.asarray(params["conv"][li]["gamma"], np.float32),
                       np.asarray(params["conv"][li]["beta"], np.float32)], axis=0)
        ops += [jnp.asarray(mt, dtype=jnp.bfloat16),              # heavy matmul -> bf16
                jnp.asarray(r), jnp.asarray(rt), jnp.asarray(gb)]
        spatials.append(wout * wout)

    wf = np.asarray(params["final_w"], np.float32)                # (out_ch, cin, K, K)
    mtf = _conv_layer_matrix(wf, widths[-1], out_w, final_pad)
    bias_full = np.repeat(np.asarray(params["final_b"], np.float32),
                          out_w * out_w)[None, :]                 # (1, out_ch*out_w^2)
    ops += [jnp.asarray(mtf, dtype=jnp.bfloat16), jnp.asarray(bias_full)]

    meta = dict(widths=widths, chans=chans, final_pad=final_pad,
                out_w=out_w, spatials=spatials)
    return ops, meta


# ---------------------------------------------------------------------------
# Fused whole-decoder Pallas kernel
# ---------------------------------------------------------------------------
def _make_decoder_kernel(num_layers, batch, spatials, eps=EPS):
    """Ref order:
         z, fc_wT, fc_gb, [Mt, R, Rt, gb] * num_layers, Mt_final, bias, out
    """

    def kernel(*refs):
        z_ref, fcw_ref, fcgb_ref = refs[0], refs[1], refs[2]
        conv_refs = refs[3:3 + 4 * num_layers]
        mtf_ref, bias_ref, o_ref = refs[3 + 4 * num_layers:]

        def mm(a, b):
            return jnp.dot(a, b, preferred_element_type=jnp.float32)

        # ---- fc: Linear(bias=False) + BatchNorm1d(train) + ReLU.
        #      Layout (N, feat): per-feature BN stats are 2-row sublane reductions.
        f = mm(z_ref[...], fcw_ref[...])
        gb = fcgb_ref[...]
        mu = jnp.mean(f, axis=0, keepdims=True)
        var = jnp.mean(f * f, axis=0, keepdims=True) - mu * mu
        sc = gb[0:1, :] * jax.lax.rsqrt(var + eps)
        x = jnp.maximum(f * sc + (gb[1:2, :] - mu * sc), 0.0)
        # torch's `output.view(N, C, 2, 2)` is the identity in this (N, C*H*W) layout.

        # ---- ConvTranspose2d + BatchNorm2d(train) + ReLU stack.
        for li in range(num_layers):
            mt_ref, r_ref, rt_ref, gb_ref = conv_refs[4 * li:4 * li + 4]
            inv_cnt = 1.0 / float(batch * spatials[li])
            # the whole transposed conv = ONE fat MXU matmul (bf16 in, f32 acc)
            y = mm(x.astype(jnp.bfloat16), mt_ref[...])           # (N, cout*wout^2)
            # fused single-pass batch stats: sum and sum-of-squares per channel
            s1 = mm(y, r_ref[...])                                # (N, cout)
            s2 = mm(y * y, r_ref[...])                            # (N, cout)
            mu = jnp.sum(s1, axis=0, keepdims=True) * inv_cnt     # (1, cout)
            var = jnp.sum(s2, axis=0, keepdims=True) * inv_cnt - mu * mu
            gbl = gb_ref[...]
            sc = gbl[0:1, :] * jax.lax.rsqrt(var + eps)
            sh = gbl[1:2, :] - mu * sc
            # expand per-channel scale/shift back to the lane layout and apply
            x = jnp.maximum(y * mm(sc, rt_ref[...]) + mm(sh, rt_ref[...]), 0.0)

        # ---- final strided Conv2d (+bias) + Tanh: one matmul + EUP tanh
        y = mm(x.astype(jnp.bfloat16), mtf_ref[...])
        o_ref[...] = jnp.tanh(y + bias_ref[...])

    return kernel


def make_decoder_forward(params, cfg, batch):
    operands, meta = _build_decoder_operands(params, cfg, batch)
    kernel = _make_decoder_kernel(cfg["num_conv_layers"], batch, meta["spatials"])
    out_ch = cfg["output_channels"]
    out_w = meta["out_w"]
    n_in = 1 + len(operands)

    vmem = pl.BlockSpec(memory_space=pltpu.MemorySpace.VMEM)
    call = pl.pallas_call(
        kernel,
        out_shape=jax.ShapeDtypeStruct((batch, out_ch * out_w * out_w), jnp.float32),
        in_specs=[vmem] * n_in,
        out_specs=vmem,
        # real resident footprint is <1 MB; 16 MB cap leaves ample headroom and
        # is within the default scoped limit on every TPU generation.
        compiler_params=pltpu.CompilerParams(vmem_limit_bytes=16 * 1024 * 1024),
    )

    @jax.jit
    def _forward(z, *ops):
        out2d = call(z, *ops)
        return out2d.reshape(batch, out_ch, out_w, out_w)   # NCHW, as PyTorch returns

    return (lambda z: _forward(z, *operands)), meta


# ---------------------------------------------------------------------------
# Deterministic synthetic parameters (shapes dictated by the module __init__,
# stored in the PyTorch layout conventions).
# ---------------------------------------------------------------------------
def init_params(key, cfg):
    latent = cfg["latent"]
    c0 = cfg["input_channels"]
    L = cfg["num_conv_layers"]
    feat = 2 * 2 * c0
    keys = iter(jax.random.split(key, 3 * L + 5))
    p = dict(
        fc_w=0.1 * jax.random.normal(next(keys), (feat, latent), jnp.float32),
        fc_gamma=1.0 + 0.1 * jax.random.normal(next(keys), (feat,), jnp.float32),
        fc_beta=0.1 * jax.random.normal(next(keys), (feat,), jnp.float32),
        conv=[],
    )
    ch = c0
    for _ in range(L):
        co = ch // 2
        p["conv"].append(dict(
            w=0.1 * jax.random.normal(next(keys), (ch, co, K, K), jnp.float32),
            gamma=1.0 + 0.1 * jax.random.normal(next(keys), (co,), jnp.float32),
            beta=0.1 * jax.random.normal(next(keys), (co,), jnp.float32),
        ))
        ch = co
    p["final_w"] = 0.1 * jax.random.normal(
        next(keys), (cfg["output_channels"], ch, K, K), jnp.float32)
    p["final_b"] = 0.1 * jax.random.normal(
        next(keys), (cfg["output_channels"],), jnp.float32)
    return p


# ---------------------------------------------------------------------------
# Plain NumPy (float64) reference of the PyTorch train-mode forward
# ---------------------------------------------------------------------------
def _reference_forward(z, params, cfg, final_pad):
    z = np.asarray(z, np.float64)

    def bn(x, gamma, beta):
        axes = (0,) if x.ndim == 2 else (0, 2, 3)
        mu = x.mean(axis=axes, keepdims=True)
        var = ((x - mu) ** 2).mean(axis=axes, keepdims=True)
        shp = (1, -1) + (1,) * (x.ndim - 2)
        return ((x - mu) / np.sqrt(var + EPS)
                * np.asarray(gamma, np.float64).reshape(shp)
                + np.asarray(beta, np.float64).reshape(shp))

    y = z @ np.asarray(params["fc_w"], np.float64).T
    y = np.maximum(bn(y, params["fc_gamma"], params["fc_beta"]), 0.0)
    x = y.reshape(len(z), cfg["input_channels"], 2, 2)

    for lp in params["conv"]:
        w = np.asarray(lp["w"], np.float64)                        # (cin, cout, K, K)
        n, cin, h, wdt = x.shape
        cout = w.shape[1]
        ho = (h - 1) * STRIDE - 2 * PAD + (K - 1) + OUT_PAD + 1
        wo = (wdt - 1) * STRIDE - 2 * PAD + (K - 1) + OUT_PAD + 1
        out = np.zeros((n, cout, ho, wo), np.float64)
        for iy in range(h):
            for ix in range(wdt):
                pix = x[:, :, iy, ix]                              # (n, cin)
                for ky in range(K):
                    oy = iy * STRIDE - PAD + ky
                    if not 0 <= oy < ho:
                        continue
                    for kx in range(K):
                        ox = ix * STRIDE - PAD + kx
                        if 0 <= ox < wo:
                            out[:, :, oy, ox] += pix @ w[:, :, ky, kx]
        x = np.maximum(bn(out, lp["gamma"], lp["beta"]), 0.0)

    wf = np.asarray(params["final_w"], np.float64)                 # (out_ch, cin, K, K)
    bf = np.asarray(params["final_b"], np.float64)
    n, cin, h, wdt = x.shape
    out_ch = wf.shape[0]
    ho = (h + 2 * final_pad - K) // STRIDE + 1
    wo = (wdt + 2 * final_pad - K) // STRIDE + 1
    out = np.zeros((n, out_ch, ho, wo), np.float64)
    for oy in range(ho):
        for ox in range(wo):
            acc = np.zeros((n, out_ch), np.float64)
            for ky in range(K):
                iy = oy * STRIDE - final_pad + ky
                if not 0 <= iy < h:
                    continue
                for kx in range(K):
                    ix = ox * STRIDE - final_pad + kx
                    if 0 <= ix < wdt:
                        acc += x[:, :, iy, ix] @ wf[:, :, ky, kx].T
            out[:, :, oy, ox] = acc + bf[None, :]
    return np.tanh(out)


if __name__ == "__main__":
    # small config consistent with the module's constructor parameters
    cfg = dict(latent=4, num_conv_layers=3, input_channels=16,
               output_channels=1, input_image_width=10)
    batch = 2
    kz, kp = jax.random.split(jax.random.PRNGKey(0))
    z = jax.random.normal(kz, (batch, cfg["latent"]), jnp.float32)
    params = init_params(kp, cfg)

    forward, meta = make_decoder_forward(params, cfg, batch)
    out = jax.block_until_ready(forward(z))

    expected = (batch, cfg["output_channels"],
                cfg["input_image_width"], cfg["input_image_width"])
    assert out.shape == expected, (out.shape, expected)
    assert out.dtype == jnp.float32
    assert bool(jnp.all(jnp.isfinite(out)))

    # Cross-check against a float64 NumPy implementation of the PyTorch forward
    # (tolerance allows for the bf16 matmul operands / f32 MXU accumulation).
    ref = _reference_forward(np.asarray(z), params, cfg, meta["final_pad"])
    max_err = float(np.max(np.abs(np.asarray(out, np.float64) - ref)))
    assert max_err < 5e-2, f"kernel/reference mismatch: max abs err {max_err}"

    print("KERNEL_OK")
</pallas_src>

<mosaic_0001>
module attributes {stable_mosaic.version = 11 : i64} {
  func.func @kernel(%arg0: memref<2x4xf32, #tpu.memory_space<vmem>>, %arg1: memref<4x64xf32, #tpu.memory_space<vmem>>, %arg2: memref<2x64xf32, #tpu.memory_space<vmem>>, %arg3: memref<64x128xbf16, #tpu.memory_space<vmem>>, %arg4: memref<128x8xf32, #tpu.memory_space<vmem>>, %arg5: memref<8x128xf32, #tpu.memory_space<vmem>>, %arg6: memref<2x8xf32, #tpu.memory_space<vmem>>, %arg7: memref<128x256xbf16, #tpu.memory_space<vmem>>, %arg8: memref<256x4xf32, #tpu.memory_space<vmem>>, %arg9: memref<4x256xf32, #tpu.memory_space<vmem>>, %arg10: memref<2x4xf32, #tpu.memory_space<vmem>>, %arg11: memref<256x512xbf16, #tpu.memory_space<vmem>>, %arg12: memref<512x2xf32, #tpu.memory_space<vmem>>, %arg13: memref<2x512xf32, #tpu.memory_space<vmem>>, %arg14: memref<2x2xf32, #tpu.memory_space<vmem>>, %arg15: memref<512x100xbf16, #tpu.memory_space<vmem>>, %arg16: memref<1x100xf32, #tpu.memory_space<vmem>>, %arg17: memref<2x100xf32, #tpu.memory_space<vmem>>) attributes {dimension_semantics = [], scalar_prefetch = 0 : i64, scratch_operands = 0 : i64, tpu.core_type = #tpu.core_type<tc>} {
    %c0 = arith.constant 0 : index
    %c0_0 = arith.constant 0 : index
    %0 = vector.load %arg0[%c0, %c0_0] : memref<2x4xf32, #tpu.memory_space<vmem>>, vector<2x4xf32>
    %c0_1 = arith.constant 0 : index
    %c0_2 = arith.constant 0 : index
    %1 = vector.load %arg1[%c0_1, %c0_2] : memref<4x64xf32, #tpu.memory_space<vmem>>, vector<4x64xf32>
    %cst = arith.constant dense<0.000000e+00> : vector<2x64xf32>
    %2 = tpu.matmul %0, %1, %cst {dimension_numbers = #tpu.dot_dimension_numbers<[1], [0], [0], [1], [0, 0, 1, 1], [], []>} : vector<2x4xf32>, vector<4x64xf32>, vector<2x64xf32> -> vector<2x64xf32>
    %c0_3 = arith.constant 0 : index
    %c0_4 = arith.constant 0 : index
    %3 = vector.load %arg2[%c0_3, %c0_4] : memref<2x64xf32, #tpu.memory_space<vmem>>, vector<2x64xf32>
    %cst_5 = arith.constant dense<0.000000e+00> : vector<64xf32>
    %4 = vector.multi_reduction <add>, %2, %cst_5 [0] : vector<2x64xf32> to vector<64xf32>
    %5 = vector.shape_cast %4 : vector<64xf32> to vector<1x64xf32>
    %cst_6 = arith.constant 2.000000e+00 : f32
    %6 = vector.broadcast %cst_6 : f32 to vector<1x64xf32>
    %7 = arith.divf %5, %6 : vector<1x64xf32>
    %8 = arith.mulf %2, %2 : vector<2x64xf32>
    %cst_7 = arith.constant dense<0.000000e+00> : vector<64xf32>
    %9 = vector.multi_reduction <add>, %8, %cst_7 [0] : vector<2x64xf32> to vector<64xf32>
    %10 = vector.shape_cast %9 : vector<64xf32> to vector<1x64xf32>
    %cst_8 = arith.constant 2.000000e+00 : f32
    %11 = vector.broadcast %cst_8 : f32 to vector<1x64xf32>
    %12 = arith.divf %10, %11 : vector<1x64xf32>
    %13 = arith.mulf %7, %7 : vector<1x64xf32>
    %14 = arith.subf %12, %13 : vector<1x64xf32>
    %15 = vector.extract_strided_slice %3 {offsets = [0, 0], sizes = [1, 64], strides = [1, 1]} : vector<2x64xf32> to vector<1x64xf32>
    %cst_9 = arith.constant 9.99999974E-6 : f32
    %16 = vector.broadcast %cst_9 : f32 to vector<1x64xf32>
    %17 = arith.addf %14, %16 : vector<1x64xf32>
    %18 = math.rsqrt %17 : vector<1x64xf32>
    %19 = arith.mulf %15, %18 : vector<1x64xf32>
    %20 = vector.broadcast %19 : vector<1x64xf32> to vector<2x64xf32>
    %21 = arith.mulf %2, %20 : vector<2x64xf32>
    %22 = vector.extract_strided_slice %3 {offsets = [1, 0], sizes = [1, 64], strides = [1, 1]} : vector<2x64xf32> to vector<1x64xf32>
    %23 = arith.mulf %7, %19 : vector<1x64xf32>
    %24 = arith.subf %22, %23 : vector<1x64xf32>
    %25 = vector.broadcast %24 : vector<1x64xf32> to vector<2x64xf32>
    %26 = arith.addf %21, %25 : vector<2x64xf32>
    %cst_10 = arith.constant 0.000000e+00 : f32
    %27 = vector.broadcast %cst_10 : f32 to vector<2x64xf32>
    %28 = arith.maximumf %26, %27 : vector<2x64xf32>
    %29 = arith.truncf %28 : vector<2x64xf32> to vector<2x64xbf16>
    %c0_11 = arith.constant 0 : index
    %c0_12 = arith.constant 0 : index
    %30 = vector.load %arg3[%c0_11, %c0_12] : memref<64x128xbf16, #tpu.memory_space<vmem>>, vector<64x128xbf16>
    %cst_13 = arith.constant dense<0.000000e+00> : vector<2x128xf32>
    %31 = tpu.matmul %29, %30, %cst_13 {dimension_numbers = #tpu.dot_dimension_numbers<[1], [0], [0], [1], [0, 0, 1, 1], [], []>} : vector<2x64xbf16>, vector<64x128xbf16>, vector<2x128xf32> -> vector<2x128xf32>
    %c0_14 = arith.constant 0 : index
    %c0_15 = arith.constant 0 : index
    %32 = vector.load %arg4[%c0_14, %c0_15] : memref<128x8xf32, #tpu.memory_space<vmem>>, vector<128x8xf32>
    %cst_16 = arith.constant dense<0.000000e+00> : vector<2x8xf32>
    %33 = tpu.matmul %31, %32, %cst_16 {dimension_numbers = #tpu.dot_dimension_numbers<[1], [0], [0], [1], [0, 0, 1, 1], [], []>} : vector<2x128xf32>, vector<128x8xf32>, vector<2x8xf32> -> vector<2x8xf32>
    %34 = arith.mulf %31, %31 : vector<2x128xf32>
    %c0_17 = arith.constant 0 : index
    %c0_18 = arith.constant 0 : index
    %35 = vector.load %arg4[%c0_17, %c0_18] : memref<128x8xf32, #tpu.memory_space<vmem>>, vector<128x8xf32>
    %cst_19 = arith.constant dense<0.000000e+00> : vector<2x8xf32>
    %36 = tpu.matmul %34, %35, %cst_19 {dimension_numbers = #tpu.dot_dimension_numbers<[1], [0], [0], [1], [0, 0, 1, 1], [], []>} : vector<2x128xf32>, vector<128x8xf32>, vector<2x8xf32> -> vector<2x8xf32>
    %cst_20 = arith.constant dense<0.000000e+00> : vector<8xf32>
    %37 = vector.multi_reduction <add>, %33, %cst_20 [0] : vector<2x8xf32> to vector<8xf32>
    %38 = vector.shape_cast %37 : vector<8xf32> to vector<1x8xf32>
    %cst_21 = arith.constant 3.125000e-02 : f32
    %39 = vector.broadcast %cst_21 : f32 to vector<1x8xf32>
    %40 = arith.mulf %38, %39 : vector<1x8xf32>
    %cst_22 = arith.constant dense<0.000000e+00> : vector<8xf32>
    %41 = vector.multi_reduction <add>, %36, %cst_22 [0] : vector<2x8xf32> to vector<8xf32>
    %42 = vector.shape_cast %41 : vector<8xf32> to vector<1x8xf32>
    %cst_23 = arith.constant 3.125000e-02 : f32
    %43 = vector.broadcast %cst_23 : f32 to vector<1x8xf32>
    %44 = arith.mulf %42, %43 : vector<1x8xf32>
    %45 = arith.mulf %40, %40 : vector<1x8xf32>
    %46 = arith.subf %44, %45 : vector<1x8xf32>
    %c0_24 = arith.constant 0 : index
    %c0_25 = arith.constant 0 : index
    %47 = vector.load %arg6[%c0_24, %c0_25] : memref<2x8xf32, #tpu.memory_space<vmem>>, vector<2x8xf32>
    %48 = vector.extract_strided_slice %47 {offsets = [0, 0], sizes = [1, 8], strides = [1, 1]} : vector<2x8xf32> to vector<1x8xf32>
    %cst_26 = arith.constant 9.99999974E-6 : f32
    %49 = vector.broadcast %cst_26 : f32 to vector<1x8xf32>
    %50 = arith.addf %46, %49 : vector<1x8xf32>
    %51 = math.rsqrt %50 : vector<1x8xf32>
    %52 = arith.mulf %48, %51 : vector<1x8xf32>
    %53 = vector.extract_strided_slice %47 {offsets = [1, 0], sizes = [1, 8], strides = [1, 1]} : vector<2x8xf32> to vector<1x8xf32>
    %54 = arith.mulf %40, %52 : vector<1x8xf32>
    %55 = arith.subf %53, %54 : vector<1x8xf32>
    %c0_27 = arith.constant 0 : index
    %c0_28 = arith.constant 0 : index
    %56 = vector.load %arg5[%c0_27, %c0_28] : memref<8x128xf32, #tpu.memory_space<vmem>>, vector<8x128xf32>
    %cst_29 = arith.constant dense<0.000000e+00> : vector<1x128xf32>
    %57 = tpu.matmul %52, %56, %cst_29 {dimension_numbers = #tpu.dot_dimension_numbers<[1], [0], [0], [1], [0, 0, 1, 1], [], []>} : vector<1x8xf32>, vector<8x128xf32>, vector<1x128xf32> -> vector<1x128xf32>
    %58 = vector.broadcast %57 : vector<1x128xf32> to vector<2x128xf32>
    %59 = arith.mulf %31, %58 : vector<2x128xf32>
    %c0_30 = arith.constant 0 : index
    %c0_31 = arith.constant 0 : index
    %60 = vector.load %arg5[%c0_30, %c0_31] : memref<8x128xf32, #tpu.memory_space<vmem>>, vector<8x128xf32>
    %cst_32 = arith.constant dense<0.000000e+00> : vector<1x128xf32>
    %61 = tpu.matmul %55, %60, %cst_32 {dimension_numbers = #tpu.dot_dimension_numbers<[1], [0], [0], [1], [0, 0, 1, 1], [], []>} : vector<1x8xf32>, vector<8x128xf32>, vector<1x128xf32> -> vector<1x128xf32>
    %62 = vector.broadcast %61 : vector<1x128xf32> to vector<2x128xf32>
    %63 = arith.addf %59, %62 : vector<2x128xf32>
    %cst_33 = arith.constant 0.000000e+00 : f32
    %64 = vector.broadcast %cst_33 : f32 to vector<2x128xf32>
    %65 = arith.maximumf %63, %64 : vector<2x128xf32>
    %66 = arith.truncf %65 : vector<2x128xf32> to vector<2x128xbf16>
    %c0_34 = arith.constant 0 : index
    %c0_35 = arith.constant 0 : index
    %67 = vector.load %arg7[%c0_34, %c0_35] : memref<128x256xbf16, #tpu.memory_space<vmem>>, vector<128x256xbf16>
    %cst_36 = arith.constant dense<0.000000e+00> : vector<2x256xf32>
    %68 = tpu.matmul %66, %67, %cst_36 {dimension_numbers = #tpu.dot_dimension_numbers<[1], [0], [0], [1], [0, 0, 1, 1], [], []>} : vector<2x128xbf16>, vector<128x256xbf16>, vector<2x256xf32> -> vector<2x256xf32>
    %c0_37 = arith.constant 0 : index
    %c0_38 = arith.constant 0 : index
    %69 = vector.load %arg8[%c0_37, %c0_38] : memref<256x4xf32, #tpu.memory_space<vmem>>, vector<256x4xf32>
    %cst_39 = arith.constant dense<0.000000e+00> : vector<2x4xf32>
    %70 = tpu.matmul %68, %69, %cst_39 {dimension_numbers = #tpu.dot_dimension_numbers<[1], [0], [0], [1], [0, 0, 1, 1], [], []>} : vector<2x256xf32>, vector<256x4xf32>, vector<2x4xf32> -> vector<2x4xf32>
    %71 = arith.mulf %68, %68 : vector<2x256xf32>
    %c0_40 = arith.constant 0 : index
    %c0_41 = arith.constant 0 : index
    %72 = vector.load %arg8[%c0_40, %c0_41] : memref<256x4xf32, #tpu.memory_space<vmem>>, vector<256x4xf32>
    %cst_42 = arith.constant dense<0.000000e+00> : vector<2x4xf32>
    %73 = tpu.matmul %71, %72, %cst_42 {dimension_numbers = #tpu.dot_dimension_numbers<[1], [0], [0], [1], [0, 0, 1, 1], [], []>} : vector<2x256xf32>, vector<256x4xf32>, vector<2x4xf32> -> vector<2x4xf32>
    %cst_43 = arith.constant dense<0.000000e+00> : vector<4xf32>
    %74 = vector.multi_reduction <add>, %70, %cst_43 [0] : vector<2x4xf32> to vector<4xf32>
    %75 = vector.shape_cast %74 : vector<4xf32> to vector<1x4xf32>
    %cst_44 = arith.constant 7.812500e-03 : f32
    %76 = vector.broadcast %cst_44 : f32 to vector<1x4xf32>
    %77 = arith.mulf %75, %76 : vector<1x4xf32>
    %cst_45 = arith.constant dense<0.000000e+00> : vector<4xf32>
    %78 = vector.multi_reduction <add>, %73, %cst_45 [0] : vector<2x4xf32> to vector<4xf32>
    %79 = vector.shape_cast %78 : vector<4xf32> to vector<1x4xf32>
    %cst_46 = arith.constant 7.812500e-03 : f32
    %80 = vector.broadcast %cst_46 : f32 to vector<1x4xf32>
    %81 = arith.mulf %79, %80 : vector<1x4xf32>
    %82 = arith.mulf %77, %77 : vector<1x4xf32>
    %83 = arith.subf %81, %82 : vector<1x4xf32>
    %c0_47 = arith.constant 0 : index
    %c0_48 = arith.constant 0 : index
    %84 = vector.load %arg10[%c0_47, %c0_48] : memref<2x4xf32, #tpu.memory_space<vmem>>, vector<2x4xf32>
    %85 = vector.extract_strided_slice %84 {offsets = [0, 0], sizes = [1, 4], strides = [1, 1]} : vector<2x4xf32> to vector<1x4xf32>
    %cst_49 = arith.constant 9.99999974E-6 : f32
    %86 = vector.broadcast %cst_49 : f32 to vector<1x4xf32>
    %87 = arith.addf %83, %86 : vector<1x4xf32>
    %88 = math.rsqrt %87 : vector<1x4xf32>
    %89 = arith.mulf %85, %88 : vector<1x4xf32>
    %90 = vector.extract_strided_slice %84 {offsets = [1, 0], sizes = [1, 4], strides = [1, 1]} : vector<2x4xf32> to vector<1x4xf32>
    %91 = arith.mulf %77, %89 : vector<1x4xf32>
    %92 = arith.subf %90, %91 : vector<1x4xf32>
    %c0_50 = arith.constant 0 : index
    %c0_51 = arith.constant 0 : index
    %93 = vector.load %arg9[%c0_50, %c0_51] : memref<4x256xf32, #tpu.memory_space<vmem>>, vector<4x256xf32>
    %cst_52 = arith.constant dense<0.000000e+00> : vector<1x256xf32>
    %94 = tpu.matmul %89, %93, %cst_52 {dimension_numbers = #tpu.dot_dimension_numbers<[1], [0], [0], [1], [0, 0, 1, 1], [], []>} : vector<1x4xf32>, vector<4x256xf32>, vector<1x256xf32> -> vector<1x256xf32>
    %95 = vector.broadcast %94 : vector<1x256xf32> to vector<2x256xf32>
    %96 = arith.mulf %68, %95 : vector<2x256xf32>
    %c0_53 = arith.constant 0 : index
    %c0_54 = arith.constant 0 : index
    %97 = vector.load %arg9[%c0_53, %c0_54] : memref<4x256xf32, #tpu.memory_space<vmem>>, vector<4x256xf32>
    %cst_55 = arith.constant dense<0.000000e+00> : vector<1x256xf32>
    %98 = tpu.matmul %92, %97, %cst_55 {dimension_numbers = #tpu.dot_dimension_numbers<[1], [0], [0], [1], [0, 0, 1, 1], [], []>} : vector<1x4xf32>, vector<4x256xf32>, vector<1x256xf32> -> vector<1x256xf32>
    %99 = vector.broadcast %98 : vector<1x256xf32> to vector<2x256xf32>
    %100 = arith.addf %96, %99 : vector<2x256xf32>
    %cst_56 = arith.constant 0.000000e+00 : f32
    %101 = vector.broadcast %cst_56 : f32 to vector<2x256xf32>
    %102 = arith.maximumf %100, %101 : vector<2x256xf32>
    %103 = arith.truncf %102 : vector<2x256xf32> to vector<2x256xbf16>
    %c0_57 = arith.constant 0 : index
    %c0_58 = arith.constant 0 : index
    %104 = vector.load %arg11[%c0_57, %c0_58] : memref<256x512xbf16, #tpu.memory_space<vmem>>, vector<256x512xbf16>
    %cst_59 = arith.constant dense<0.000000e+00> : vector<2x512xf32>
    %105 = tpu.matmul %103, %104, %cst_59 {dimension_numbers = #tpu.dot_dimension_numbers<[1], [0], [0], [1], [0, 0, 1, 1], [], []>} : vector<2x256xbf16>, vector<256x512xbf16>, vector<2x512xf32> -> vector<2x512xf32>
    %c0_60 = arith.constant 0 : index
    %c0_61 = arith.constant 0 : index
    %106 = vector.load %arg12[%c0_60, %c0_61] : memref<512x2xf32, #tpu.memory_space<vmem>>, vector<512x2xf32>
    %cst_62 = arith.constant dense<0.000000e+00> : vector<2x2xf32>
    %107 = tpu.matmul %105, %106, %cst_62 {dimension_numbers = #tpu.dot_dimension_numbers<[1], [0], [0], [1], [0, 0, 1, 1], [], []>} : vector<2x512xf32>, vector<512x2xf32>, vector<2x2xf32> -> vector<2x2xf32>
    %108 = arith.mulf %105, %105 : vector<2x512xf32>
    %c0_63 = arith.constant 0 : index
    %c0_64 = arith.constant 0 : index
    %109 = vector.load %arg12[%c0_63, %c0_64] : memref<512x2xf32, #tpu.memory_space<vmem>>, vector<512x2xf32>
    %cst_65 = arith.constant dense<0.000000e+00> : vector<2x2xf32>
    %110 = tpu.matmul %108, %109, %cst_65 {dimension_numbers = #tpu.dot_dimension_numbers<[1], [0], [0], [1], [0, 0, 1, 1], [], []>} : vector<2x512xf32>, vector<512x2xf32>, vector<2x2xf32> -> vector<2x2xf32>
    %cst_66 = arith.constant dense<0.000000e+00> : vector<2xf32>
    %111 = vector.multi_reduction <add>, %107, %cst_66 [0] : vector<2x2xf32> to vector<2xf32>
    %112 = vector.shape_cast %111 : vector<2xf32> to vector<1x2xf32>
    %cst_67 = arith.constant 0.001953125 : f32
    %113 = vector.broadcast %cst_67 : f32 to vector<1x2xf32>
    %114 = arith.mulf %112, %113 : vector<1x2xf32>
    %cst_68 = arith.constant dense<0.000000e+00> : vector<2xf32>
    %115 = vector.multi_reduction <add>, %110, %cst_68 [0] : vector<2x2xf32> to vector<2xf32>
    %116 = vector.shape_cast %115 : vector<2xf32> to vector<1x2xf32>
    %cst_69 = arith.constant 0.001953125 : f32
    %117 = vector.broadcast %cst_69 : f32 to vector<1x2xf32>
    %118 = arith.mulf %116, %117 : vector<1x2xf32>
    %119 = arith.mulf %114, %114 : vector<1x2xf32>
    %120 = arith.subf %118, %119 : vector<1x2xf32>
    %c0_70 = arith.constant 0 : index
    %c0_71 = arith.constant 0 : index
    %121 = vector.load %arg14[%c0_70, %c0_71] : memref<2x2xf32, #tpu.memory_space<vmem>>, vector<2x2xf32>
    %122 = vector.extract_strided_slice %121 {offsets = [0, 0], sizes = [1, 2], strides = [1, 1]} : vector<2x2xf32> to vector<1x2xf32>
    %cst_72 = arith.constant 9.99999974E-6 : f32
    %123 = vector.broadcast %cst_72 : f32 to vector<1x2xf32>
    %124 = arith.addf %120, %123 : vector<1x2xf32>
    %125 = math.rsqrt %124 : vector<1x2xf32>
    %126 = arith.mulf %122, %125 : vector<1x2xf32>
    %127 = vector.extract_strided_slice %121 {offsets = [1, 0], sizes = [1, 2], strides = [1, 1]} : vector<2x2xf32> to vector<1x2xf32>
    %128 = arith.mulf %114, %126 : vector<1x2xf32>
    %129 = arith.subf %127, %128 : vector<1x2xf32>
    %c0_73 = arith.constant 0 : index
    %c0_74 = arith.constant 0 : index
    %130 = vector.load %arg13[%c0_73, %c0_74] : memref<2x512xf32, #tpu.memory_space<vmem>>, vector<2x512xf32>
    %cst_75 = arith.constant dense<0.000000e+00> : vector<1x512xf32>
    %131 = tpu.matmul %126, %130, %cst_75 {dimension_numbers = #tpu.dot_dimension_numbers<[1], [0], [0], [1], [0, 0, 1, 1], [], []>} : vector<1x2xf32>, vector<2x512xf32>, vector<1x512xf32> -> vector<1x512xf32>
    %132 = vector.broadcast %131 : vector<1x512xf32> to vector<2x512xf32>
    %133 = arith.mulf %105, %132 : vector<2x512xf32>
    %c0_76 = arith.constant 0 : index
    %c0_77 = arith.constant 0 : index
    %134 = vector.load %arg13[%c0_76, %c0_77] : memref<2x512xf32, #tpu.memory_space<vmem>>, vector<2x512xf32>
    %cst_78 = arith.constant dense<0.000000e+00> : vector<1x512xf32>
    %135 = tpu.matmul %129, %134, %cst_78 {dimension_numbers = #tpu.dot_dimension_numbers<[1], [0], [0], [1], [0, 0, 1, 1], [], []>} : vector<1x2xf32>, vector<2x512xf32>, vector<1x512xf32> -> vector<1x512xf32>
    %136 = vector.broadcast %135 : vector<1x512xf32> to vector<2x512xf32>
    %137 = arith.addf %133, %136 : vector<2x512xf32>
    %cst_79 = arith.constant 0.000000e+00 : f32
    %138 = vector.broadcast %cst_79 : f32 to vector<2x512xf32>
    %139 = arith.maximumf %137, %138 : vector<2x512xf32>
    %140 = arith.truncf %139 : vector<2x512xf32> to vector<2x512xbf16>
    %c0_80 = arith.constant 0 : index
    %c0_81 = arith.constant 0 : index
    %141 = vector.load %arg15[%c0_80, %c0_81] : memref<512x100xbf16, #tpu.memory_space<vmem>>, vector<512x100xbf16>
    %cst_82 = arith.constant dense<0.000000e+00> : vector<2x100xf32>
    %142 = tpu.matmul %140, %141, %cst_82 {dimension_numbers = #tpu.dot_dimension_numbers<[1], [0], [0], [1], [0, 0, 1, 1], [], []>} : vector<2x512xbf16>, vector<512x100xbf16>, vector<2x100xf32> -> vector<2x100xf32>
    %c0_83 = arith.constant 0 : index
    %c0_84 = arith.constant 0 : index
    %143 = vector.load %arg16[%c0_83, %c0_84] : memref<1x100xf32, #tpu.memory_space<vmem>>, vector<1x100xf32>
    %144 = vector.broadcast %143 : vector<1x100xf32> to vector<2x100xf32>
    %145 = arith.addf %142, %144 : vector<2x100xf32>
    %146 = math.tanh %145 : vector<2x100xf32>
    %c0_85 = arith.constant 0 : index
    %c0_86 = arith.constant 0 : index
    %147 = vector.load %arg17[%c0_85, %c0_86] : memref<2x100xf32, #tpu.memory_space<vmem>>, vector<2x100xf32>
    tpu.vector_store %arg17[%c0_85, %c0_86], %146 {strides = array<i32>} : memref<2x100xf32, #tpu.memory_space<vmem>>, vector<2x100xf32>,
    return
  }
}

</mosaic_0001>

<bundles_post_ra>
// kernel: _forward.1
= control target key start
LH: loop header
LB: loop body
LE: loop exit
PB: predicated region body
PF: predicated region fallthrough
CT: control target
= control target key end

     0   :  { %vm63_vm0 = vcmask 1043456   ;;  %vm59_vm1 = vcmask 31744   ;;  %v3629_v0 = vmov 0.0   ;;  %vm3630_vm2 = vmmov 0   ;;  %s4728_s1 = inlined_call_operand.vmem [shape: f32[4,64], index: 1, kind: input, shape index: {}]   ;;  %s4729_s0 = inlined_call_operand.vmem [shape: f32[2,4], index: 0, kind: input, shape index: {}]   ;;  %s4730_s3 = inlined_call_operand.vmem [shape: bf16[64,128], index: 3, kind: input, shape index: {}]   ;;  %s4731_s4 = inlined_call_operand.vmem [shape: f32[128,8], index: 4, kind: input, shape index: {}]   ;;  %s4732_s2 = inlined_call_operand.vmem [shape: f32[2,64], index: 2, kind: input, shape index: {}]   ;;  %s4733_s5 = inlined_call_operand.vmem [shape: f32[8,128], index: 5, kind: input, shape index: {}]   ;;  %s4734_s7 = inlined_call_operand.vmem [shape: bf16[128,256], index: 7, kind: input, shape index: {}]   ;;  %s4735_s6 = inlined_call_operand.vmem [shape: f32[2,8], index: 6, kind: input, shape index: {}]   ;;  %s4736_s8 = inlined_call_operand.vmem [shape: f32[256,4], index: 8, kind: input, shape index: {}]   ;;  %s4737_s9 = inlined_call_operand.vmem [shape: f32[4,256], index: 9, kind: input, shape index: {}]   ;;  %s4738_s11 = inlined_call_operand.vmem [shape: bf16[256,512], index: 11, kind: input, shape index: {}]   ;;  %s4739_s10 = inlined_call_operand.vmem [shape: f32[2,4], index: 10, kind: input, shape index: {}]   ;;  %s4740_s12 = inlined_call_operand.vmem [shape: f32[512,2], index: 12, kind: input, shape index: {}]   ;;  %s4741_s13 = inlined_call_operand.vmem [shape: f32[2,512], index: 13, kind: input, shape index: {}]   ;;  %s4742_s15 = inlined_call_operand.vmem [shape: bf16[512,100], index: 15, kind: input, shape index: {}]   ;;  %s4743_s14 = inlined_call_operand.vmem [shape: f32[2,2], index: 14, kind: input, shape index: {}]   ;;  %s4744_s16 = inlined_call_operand.vmem [shape: f32[1,100], index: 16, kind: input, shape index: {}]   ;;  %s4745_s17 = inlined_call_operand.vmem [shape: f32[2,100], index: 17, kind: output, shape index: {}]  }
   0x1   :  { %4746 = sst [smem:[#allocation2_spill]] %s4728_s1  ;;  %3119 = vmatprep.subr.mxu0 %v3629_v0  ;;  %3121 = vmatprep.mubr.msk.f32.mxu0 %vm3630_vm2, %v3629_v0  ;;  %v3461_v3 = vld [vmem:[%s4730_s3] sm:$0xff]   ;;  %v3462_v4 = vld [vmem:[%s4730_s3 + $0x8] sm:$0xff]   ;;  %v3463_v5 = vld [vmem:[%s4730_s3 + $0x10] sm:$0xff]   ;;  %v3631_v7 = vmov 0.0|0.0   ;;  %vm138_vm3 = vcmask 517120   ;;  %v162_v54 = vlaneseq }
   0x2   :  { %4747 = sst [smem:[#allocation3_spill]] %s4729_s0  ;;  %s4748_s26 = sld [smem:[#allocation2_spill]]  ;;  %3124 = vmatprep.subr.bf16.mxu1 %v3629_v0  ;;  %3132 = vmatprep.mubr.msk.bf16.mxu1 %vm3630_vm2, %v3629_v0  ;;  %v3464_v6 = vld [vmem:[%s4730_s3 + $0x18] sm:$0xff]   ;;  %v255_v8 = vld [vmem:[%s4731_s4] sm:$0xff]  ;;  %v256_v9 = vld [vmem:[%s4731_s4 + $0x8] sm:$0xff]  ;;  %vm211_vm4 = vcmask 523264  }
   0x3   :  { %s4749_s29 = sld [smem:[#allocation3_spill]]  ;;  %3125 = vmatpush3.bf16.msra.mxu1 %v3461_v3  ;;  %v257_v10 = vld [vmem:[%s4731_s4 + $0x10] sm:$0xff]  ;;  %v3766_v11 = vpack.c.bf16 %v256_v9, %v255_v8  ;;  %v258_v12 = vld [vmem:[%s4731_s4 + $0x18] sm:$0xff]  ;;  %v259_v14 = vld [vmem:[%s4731_s4 + $0x20] sm:$0xff]  ;;  %v3834_v55 = vshrl.u32 %v162_v54, 7  ;;  %vm412_vm5 = vcmask 58368  }
   0x4   :  { %3126 = vmatprep.subr.bf16.mxu1 %v3629_v0  ;;  %v3772_v13 = vpack.c.bf16 %v258_v12, %v257_v10  ;;  %v260_v15 = vld [vmem:[%s4731_s4 + $0x28] sm:$0xff]  ;;  %v261_v17 = vld [vmem:[%s4731_s4 + $0x30] sm:$0xff]  ;;  %v262_v18 = vld [vmem:[%s4731_s4 + $0x38] sm:$0xff]  ;;  %vm441_vm6 = vcmask 64512   ;;  %vm912_vm7 = vcmask 25600   ;;  %vm1985_vm8 = vcmask 1041408  }
   0x5   :  { %v3782_v16 = vpack.c.bf16 %v260_v15, %v259_v14  ;;  %v3792_v19 = vpack.c.bf16 %v262_v18, %v261_v17  ;;  %v263_v20 = vld [vmem:[%s4731_s4 + $0x40] sm:$0xff]  ;;  %v264_v21 = vld [vmem:[%s4731_s4 + $0x48] sm:$0xff]  ;;  %v265_v23 = vld [vmem:[%s4731_s4 + $0x50] sm:$0xff]  ;;  %v3840_v59 = vsub.s32 0, %v3834_v55  ;;  %v174_v63 = vsub.s32 1, %v3834_v55 }
   0x6   :  { %v3802_v22 = vpack.c.bf16 %v264_v21, %v263_v20  ;;  %v266_v24 = vld [vmem:[%s4731_s4 + $0x58] sm:$0xff]  ;;  %v267_v26 = vld [vmem:[%s4731_s4 + $0x60] sm:$0xff]  ;;  %v268_v27 = vld [vmem:[%s4731_s4 + $0x68] sm:$0xff]  ;;  %vm1934_vm9 = vcmask 9216   ;;  %vm1981_vm10 = vcmask 15360   ;;  %vm2674_vm11 = vcmask 812032  }
   0x7   :  { %3127 = vmatpush3.bf16.msra.mxu1 %v3462_v4  ;;  %v3812_v25 = vpack.c.bf16 %v266_v24, %v265_v23  ;;  %v3822_v28 = vpack.c.bf16 %v268_v27, %v267_v26  ;;  %v269_v29 = vld [vmem:[%s4731_s4 + $0x70] sm:$0xff]  ;;  %v270_v30 = vld [vmem:[%s4731_s4 + $0x78] sm:$0xff]  ;;  %v137_v56 = vld [vmem:[%s4732_s2] sm:$0x3] }
   0x8   :  { %v58_v1 = vld [vmem:[%s4748_s26] sm:$0xf]  ;;  %3128 = vmatprep.subr.bf16.mxu1 %v3629_v0  ;;  %v3238_v31 = vpack.c.bf16 %v270_v30, %v269_v29  ;;  %v3482_v54 = vld [vmem:[%s4734_s7 + $0x54] ss:$8 sps:$4 sm:$0xff]  }
   0x9   :  { %v57_v2 = vld [vmem:[%s4749_s29] sm:$0x3]  ;;  %3120 = vmatpush3.msk.msra.mxu0 %vm63_vm0, %v58_v1 }
   0xa   :  { %3122 = vmatmul.mubr.msk.f32.vlgmr.msra.gmra.mrb[0].mxu0 %vm59_vm1, %v57_v2  ;;  %3216 = vmatprep.subr.bf16.mxu0 %v3631_v7 }
   0xb   :  { %3168 = vmatprep.mubr.msk.f32.mxu0 %vm3630_vm2, %v3629_v0  ;;  %3129 = vmatpush3.bf16.msra.mxu1 %v3463_v5 }
   0xc   :  { %3130 = vmatprep.subr.bf16.mxu1 %v3629_v0  ;;  %3218 = vmatpush3.bf16.msra.mxu0 %v3766_v11 }
   0xd   :  { %3219 = vmatprep.subr.bf16.mxu0 %v3631_v7 }
   0xf   :  { %3131 = vmatpush3.bf16.msra.mxu1 %v3464_v6 }
  0x10   :  { %3240 = vmatprep.subr.bf16.mxu1 %v3631_v7  ;;  %3221 = vmatpush3.bf16.msra.mxu0 %v3772_v13 }
  0x11   :  { %3222 = vmatprep.subr.bf16.mxu0 %v3631_v7 }
  0x14   :  { %3224 = vmatpush3.bf16.msra.mxu0 %v3782_v16 }
  0x15   :  { %3225 = vmatprep.subr.bf16.mxu0 %v3631_v7 }
  0x18   :  { %3227 = vmatpush3.bf16.msra.mxu0 %v3792_v19 }
  0x19   :  { %3228 = vmatprep.subr.bf16.mxu0 %v3631_v7 }
  0x1c   :  { %3230 = vmatpush3.bf16.msra.mxu0 %v3802_v22 }
  0x1d   :  { %3231 = vmatprep.subr.bf16.mxu0 %v3631_v7 }
  0x20   :  { %3233 = vmatpush3.bf16.msra.mxu0 %v3812_v25 }
  0x21   :  { %3234 = vmatprep.subr.bf16.mxu0 %v3631_v7 }
  0x24   :  { %3236 = vmatpush3.bf16.msra.mxu0 %v3822_v28 }
  0x25   :  { %3237 = vmatprep.subr.bf16.mxu0 %v3631_v7 }
  0x28   :  { %3239 = vmatpush3.bf16.msra.mxu0 %v3238_v31 }
  0x29   :  { %3206 = vmatprep.subr.mxu0 %v3629_v0 }
  0xdd   :  { %v133_v32 = vpop.f32.mrb[0].mxu0 }
  0xde   :  { %v139_v33 = vsel %vm138_vm3, %v133_v32, 0.0  ;;  %v148_v34 = vmul.f32 %v133_v32, %v133_v32  ;;  %v3123_v35 = vpop.f32.mrb[1].mxu0 }
  0xdf   :  { %v140_v36 = vrot.slane %v139_v33, 4 }
  0xe0   :  { %v149_v37 = vsel %vm138_vm3, %v148_v34, 0.0 }
  0xe1   :  { %v141_v38 = vadd.f32 %v140_v36, %v139_v33  ;;  %v150_v39 = vrot.slane %v149_v37, 4  ;;  %v431_v36 = vld [vmem:[%s4735_s6] sm:$0x3] }
  0xe3   :  { %v142_v40 = vrot.slane %v141_v38, 2  ;;  %v151_v41 = vadd.f32 %v150_v39, %v149_v37  ;;  %v3467_v39 = vld [vmem:[%s4734_s7 + $0x4] ss:$8 sps:$4 sm:$0xff]  }
  0xe5   :  { %v143_v42 = vadd.f32 %v142_v40, %v141_v38  ;;  %v152_v43 = vrot.slane %v151_v41, 2 }
  0xe7   :  { %v144_v44 = vrot.slane %v143_v42, 1  ;;  %v153_v45 = vadd.f32 %v152_v43, %v151_v41  ;;  %v3465_v43 = vld [vmem:[%s4734_s7] ss:$8 sps:$4 sm:$0xff]  }
  0xe9   :  { %v145_v46 = vadd.f32 %v144_v44, %v143_v42  ;;  %v154_v47 = vrot.slane %v153_v45, 1 }
  0xeb   :  { %v147_v48 = vmul.f32 0.5, %v145_v46  ;;  %v155_v49 = vadd.f32 %v154_v47, %v153_v45  ;;  %v3470_v45 = vld [vmem:[%s4734_s7 + $0x14] ss:$8 sps:$4 sm:$0xff]   ;;  %v3468_v46 = vld [vmem:[%s4734_s7 + $0x10] ss:$8 sps:$4 sm:$0xff]  }
  0xec   :  { %v3473_v47 = vld [vmem:[%s4734_s7 + $0x24] ss:$8 sps:$4 sm:$0xff]  }
  0xed   :  { %v156_v50 = vmul.f32 0.5, %v155_v49  ;;  %v157_v51 = vmul.f32 %v147_v48, %v147_v48  ;;  %v3476_v49 = vld [vmem:[%s4734_s7 + $0x34] ss:$8 sps:$4 sm:$0xff]  }
  0xef   :  { %v158_v52 = vsub.f32 %v156_v50, %v157_v51  ;;  %v3474_v50 = vld [vmem:[%s4734_s7 + $0x30] ss:$8 sps:$4 sm:$0xff]   ;;  %v3479_v51 = vld [vmem:[%s4734_s7 + $0x44] ss:$8 sps:$4 sm:$0xff]  }
  0xf1   :  { %v159_v53 = vadd.f32 1e-05, %v158_v52  ;;  %v3477_v52 = vld [vmem:[%s4734_s7 + $0x40] ss:$8 sps:$4 sm:$0xff]  }
  0xf3   :  { %3619 = vrsqrt.f32 %v159_v53  ;;  %v3480_v53 = vld [vmem:[%s4734_s7 + $0x50] ss:$8 sps:$4 sm:$0xff]  }
  0xfd   :  { %v3620_v57 = vpop.eup %3619 }
  0xfe   :  { %v161_v58 = vmul.f32 %v3620_v57, %v137_v56  ;;  %v3483_v57 = vld [vmem:[%s4734_s7 + $0x60] ss:$8 sps:$4 sm:$0xff]  }
 0x100   :  { %v167_v60 = vmul.f32 %v161_v58, %v147_v48  ;;  %v165_v61 = vrot.slane %v161_v58, %v3840_v59  ;;  %v3471_v48 = vld [vmem:[%s4734_s7 + $0x20] ss:$8 sps:$4 sm:$0xff]   ;;  %v3488_v58 = vld [vmem:[%s4734_s7 + $0x74] ss:$8 sps:$4 sm:$0xff]  }
 0x102   :  { %v169_v62 = vrot.slane %v167_v60, 7  ;;  %v166_v2 = vmul.f32 %v165_v61, %v133_v32  ;;  %v3486_v60 = vld [vmem:[%s4734_s7 + $0x70] ss:$8 sps:$4 sm:$0xff]   ;;  %v3632_v61 = vmov 0  }
 0x104   :  { %v171_v1 = vsub.f32 %v137_v56, %v169_v62  ;;  %v3485_v56 = vld [vmem:[%s4734_s7 + $0x64] ss:$8 sps:$4 sm:$0xff]  }
 0x105   :  { %v754_v62 = vld [vmem:[%s4736_s8 + $0x80] sm:$0xff] }
 0x106   :  { %v175_v3 = vrot.slane %v171_v1, %v174_v63  ;;  %v755_v63 = vld [vmem:[%s4736_s8 + $0x88] sm:$0xff]  ;;  %v738_v1 = vld [vmem:[%s4736_s8] sm:$0xff] }
 0x108   :  { %v176_v4 = vadd.f32 %v175_v3, %v166_v2  ;;  %v3264_v2 = vpack.c.bf16 %v755_v63, %v754_v62  ;;  %v739_v3 = vld [vmem:[%s4736_s8 + $0x8] sm:$0xff] }
 0x10a   :  { %v177_v5 = vmax.f32 %v176_v4, 0.0  ;;  %v756_v4 = vld [vmem:[%s4736_s8 + $0x90] sm:$0xff] }
 0x10c   :  { %v178_v6 = vpack.c.bf16 %v177_v5, %v177_v5  ;;  %v757_v5 = vld [vmem:[%s4736_s8 + $0x98] sm:$0xff] }
 0x10e   :  { %3133 = vmatmul.mubr.msk.bf16.vlgmr.msra.gmra.mrb[0].mxu1 %vm211_vm4, %v178_v6  ;;  %v3942_v6 = vpack.c.bf16 %v739_v3, %v738_v1 }
 0x10f   :  { %3242 = vmatpush3.bf16.msra.mxu1 %v3766_v11  ;;  %3203 = vmatprep.mubr.msk.f32.mxu1 %vm3630_vm2, %v3629_v0 }
 0x110   :  { %3243 = vmatprep.subr.bf16.mxu1 %v3631_v7 }
 0x113   :  { %3245 = vmatpush3.bf16.msra.mxu1 %v3772_v13  ;;  %v440_v13 = vld [vmem:[%s4733_s5] sm:$0xff] }
 0x114   :  { %3246 = vmatprep.subr.bf16.mxu1 %v3631_v7 }
 0x117   :  { %3248 = vmatpush3.bf16.msra.mxu1 %v3782_v16 }
 0x118   :  { %3249 = vmatprep.subr.bf16.mxu1 %v3631_v7 }
 0x11b   :  { %3251 = vmatpush3.bf16.msra.mxu1 %v3792_v19 }
 0x11c   :  { %3252 = vmatprep.subr.bf16.mxu1 %v3631_v7 }
 0x11f   :  { %3254 = vmatpush3.bf16.msra.mxu1 %v3802_v22 }
 0x120   :  { %3255 = vmatprep.subr.bf16.mxu1 %v3631_v7 }
 0x123   :  { %3257 = vmatpush3.bf16.msra.mxu1 %v3812_v25 }
 0x124   :  { %3258 = vmatprep.subr.bf16.mxu1 %v3631_v7 }
 0x127   :  { %3260 = vmatpush3.bf16.msra.mxu1 %v3822_v28 }
 0x128   :  { %3261 = vmatprep.subr.bf16.mxu1 %v3631_v7 }
 0x12b   :  { %3263 = vmatpush3.bf16.msra.mxu1 %v3238_v31 }
 0x12c   :  { %3265 = vmatprep.subr.bf16.mxu1 %v3264_v2 }
 0x1e1   :  { %v3860_v8 = vpop.f32.mrb[0].mxu1 }
 0x1e2   :  { %v341_v9 = vmul.f32 %v3860_v8, %v3860_v8  ;;  %v3134_v10 = vpop.f32.mrb[1].mxu1  ;;  %3169 = vmatmul.mubr.f32.vlgmr.msra.gmra.mrb[2].mxu0 %v3860_v8 }
 0x1e3   :  { %v252_v11 = vpop.f32.mrb[2].mxu1  ;;  %3208 = vmatprep.mubr.msk.f32.mxu0 %vm3630_vm2, %v3629_v0  ;;  %3207 = vmatpush3.msra.mxu0 %v440_v13  ;;  %v740_v10 = vld [vmem:[%s4736_s8 + $0x10] sm:$0xff] }
 0x1e4   :  { %v3135_v12 = vpop.f32.mrb[3].mxu1  ;;  %3204 = vmatmul.mubr.f32.vlgmr.msra.gmra.mrb[4].mxu1 %v341_v9  ;;  %3211 = vmatprep.subr.mxu0 %v3629_v0  ;;  %v3944_v9 = vpack.c.bf16 %v757_v5, %v756_v4  ;;  %v741_v11 = vld [vmem:[%s4736_s8 + $0x18] sm:$0xff] }
 0x1e5   :  { %3267 = vmatpush3.bf16.msra.mxu1 %v3942_v6  ;;  %v3270_v12 = vpack.c.bf16 %v741_v11, %v740_v10  ;;  %v3493_v4 = vld [vmem:[%s4738_s11 + $0x8] ss:$16 sps:$4 sm:$0xff]   ;;  %v3495_v5 = vld [vmem:[%s4738_s11 + $0xc] ss:$16 sps:$4 sm:$0xff]  }
 0x1e6   :  { %3269 = vmatprep.subr.bf16.mxu1 %v3944_v9  ;;  %v3507_v10 = vld [vmem:[%s4738_s11 + $0x4c] ss:$16 sps:$4 sm:$0xff]   ;;  %v3505_v11 = vld [vmem:[%s4738_s11 + $0x48] ss:$16 sps:$4 sm:$0xff]  }
 0x1e9   :  { %3271 = vmatpush3.bf16.msra.mxu1 %v3270_v12 }
 0x2b5   :  { %v337_v7 = vpop.f32.mrb[2].mxu0 }
 0x2b6   :  { %v413_v14 = vsel %vm412_vm5, %v337_v7, 0.0  ;;  %v3170_v15 = vpop.f32.mrb[3].mxu0  ;;  %v759_v7 = vld [vmem:[%s4736_s8 + $0xa8] sm:$0xff] }
 0x2b7   :  { %v414_v16 = vrot.slane %v413_v14, 4  ;;  %v408_v17 = vpop.f32.mrb[4].mxu1  ;;  %v742_v15 = vld [vmem:[%s4736_s8 + $0x20] sm:$0xff] }
 0x2b8   :  { %v421_v18 = vsel %vm412_vm5, %v408_v17, 0.0  ;;  %v3205_v19 = vpop.f32.mrb[5].mxu1 }
 0x2b9   :  { %v415_v20 = vadd.f32 %v414_v16, %v413_v14  ;;  %v422_v21 = vrot.slane %v421_v18, 4  ;;  %v743_v16 = vld [vmem:[%s4736_s8 + $0x28] sm:$0xff]  ;;  %v761_v19 = vld [vmem:[%s4736_s8 + $0xb8] sm:$0xff] }
 0x2ba   :  { %v3274_v17 = vpack.c.bf16 %v743_v16, %v742_v15  ;;  %v3525_v15 = vld [vmem:[%s4738_s11 + $0xac] ss:$16 sps:$4 sm:$0xff]   ;;  %v3523_v16 = vld [vmem:[%s4738_s11 + $0xa8] ss:$16 sps:$4 sm:$0xff]  }
 0x2bb   :  { %v416_v22 = vrot.slane %v415_v20, 2  ;;  %v423_v23 = vadd.f32 %v422_v21, %v421_v18  ;;  %v760_v18 = vld [vmem:[%s4736_s8 + $0xb0] sm:$0xff] }
 0x2bc   :  { %v744_v21 = vld [vmem:[%s4736_s8 + $0x30] sm:$0xff] }
 0x2bd   :  { %v417_v24 = vadd.f32 %v416_v22, %v415_v20  ;;  %v424_v25 = vrot.slane %v423_v23, 2  ;;  %v3276_v20 = vpack.c.bf16 %v761_v19, %v760_v18  ;;  %v745_v22 = vld [vmem:[%s4736_s8 + $0x38] sm:$0xff] }
 0x2be   :  { %v3529_v18 = vld [vmem:[%s4738_s11 + $0xc8] ss:$16 sps:$4 sm:$0xff]   ;;  %v3537_v19 = vld [vmem:[%s4738_s11 + $0xec] ss:$16 sps:$4 sm:$0xff]  }
 0x2bf   :  { %v418_v26 = vrot.slane %v417_v24, 1  ;;  %v425_v27 = vadd.f32 %v424_v25, %v423_v23  ;;  %v3278_v23 = vpack.c.bf16 %v745_v22, %v744_v21  ;;  %v763_v25 = vld [vmem:[%s4736_s8 + $0xc8] sm:$0xff] }
 0x2c0   :  { %v3543_v21 = vld [vmem:[%s4738_s11 + $0x10c] ss:$16 sps:$4 sm:$0xff]   ;;  %v3541_v22 = vld [vmem:[%s4738_s11 + $0x108] ss:$16 sps:$4 sm:$0xff]  }
 0x2c1   :  { %v419_v28 = vadd.f32 %v418_v26, %v417_v24  ;;  %v426_v29 = vrot.slane %v425_v27, 1  ;;  %v762_v24 = vld [vmem:[%s4736_s8 + $0xc0] sm:$0xff] }
 0x2c2   :  { %v3280_v26 = vpack.c.bf16 %v763_v25, %v762_v24  ;;  %v3547_v24 = vld [vmem:[%s4738_s11 + $0x128] ss:$16 sps:$4 sm:$0xff]   ;;  %v3555_v25 = vld [vmem:[%s4738_s11 + $0x14c] ss:$16 sps:$4 sm:$0xff]  }
 0x2c3   :  { %v420_v30 = vmul.f32 0.03125, %v419_v28  ;;  %v427_v31 = vadd.f32 %v426_v29, %v425_v27  ;;  %v746_v27 = vld [vmem:[%s4736_s8 + $0x40] sm:$0xff]  ;;  %v747_v28 = vld [vmem:[%s4736_s8 + $0x48] sm:$0xff] }
 0x2c4   :  { %v3282_v29 = vpack.c.bf16 %v747_v28, %v746_v27  ;;  %v3561_v27 = vld [vmem:[%s4738_s11 + $0x16c] ss:$16 sps:$4 sm:$0xff]   ;;  %v3559_v28 = vld [vmem:[%s4738_s11 + $0x168] ss:$16 sps:$4 sm:$0xff]  }
 0x2c5   :  { %v429_v32 = vmul.f32 %v420_v30, %v420_v30  ;;  %v428_v33 = vmul.f32 0.03125, %v427_v31  ;;  %v765_v31 = vld [vmem:[%s4736_s8 + $0xd8] sm:$0xff] }
 0x2c7   :  { %v430_v34 = vsub.f32 %v428_v33, %v429_v32  ;;  %v748_v33 = vld [vmem:[%s4736_s8 + $0x50] sm:$0xff] }
 0x2c9   :  { %v432_v35 = vadd.f32 1e-05, %v430_v34  ;;  %v749_v34 = vld [vmem:[%s4736_s8 + $0x58] sm:$0xff] }
 0x2cb   :  { %3621 = vrsqrt.f32 %v432_v35  ;;  %v3286_v35 = vpack.c.bf16 %v749_v34, %v748_v33 }
 0x2d5   :  { %v3622_v37 = vpop.eup %3621 }
 0x2d6   :  { %v434_v38 = vmul.f32 %v3622_v37, %v431_v36  ;;  %v767_v37 = vld [vmem:[%s4736_s8 + $0xe8] sm:$0xff] }
 0x2d8   :  { %v435_v40 = vmul.f32 %v434_v38, %v420_v30  ;;  %3209 = vmatmul.mubr.msk.f32.vlgmr.msra.gmra.mrb[4].mxu0 %vm441_vm6, %v434_v38  ;;  %v764_v30 = vld [vmem:[%s4736_s8 + $0xd0] sm:$0xff] }
 0x2d9   :  { %3212 = vmatpush3.msra.mxu0 %v440_v13  ;;  %3213 = vmatprep.mubr.msk.f32.mxu0 %vm3630_vm2, %v3629_v0  ;;  %v758_v13 = vld [vmem:[%s4736_s8 + $0xa0] sm:$0xff]  ;;  %v3284_v32 = vpack.c.bf16 %v765_v31, %v764_v30 }
 0x2da   :  { %v437_v41 = vrot.slane %v435_v40, 7  ;;  %697 = vmatprep.subr.bf16.mxu0 %v3467_v39  ;;  %v3272_v14 = vpack.c.bf16 %v759_v7, %v758_v13  ;;  %v750_v39 = vld [vmem:[%s4736_s8 + $0x60] sm:$0xff]  ;;  %v751_v40 = vld [vmem:[%s4736_s8 + $0x68] sm:$0xff] }
 0x2db   :  { %v3511_v13 = vld [vmem:[%s4738_s11 + $0x68] ss:$16 sps:$4 sm:$0xff]   ;;  %v3519_v7 = vld [vmem:[%s4738_s11 + $0x8c] ss:$16 sps:$4 sm:$0xff]  }
 0x2dc   :  { %v439_v42 = vsub.f32 %v431_v36, %v437_v41  ;;  %3273 = vmatprep.subr.bf16.mxu1 %v3272_v14  ;;  %v766_v36 = vld [vmem:[%s4736_s8 + $0xe0] sm:$0xff]  ;;  %v3290_v41 = vpack.c.bf16 %v751_v40, %v750_v39 }
 0x2dd   :  { %3275 = vmatpush3.bf16.msra.mxu1 %v3274_v17  ;;  %v3288_v38 = vpack.c.bf16 %v767_v37, %v766_v36 }
 0x2de   :  { %v521_v44 = vrot.slane %v439_v42, 1  ;;  %3277 = vmatprep.subr.bf16.mxu1 %v3276_v20  ;;  %v768_v42 = vld [vmem:[%s4736_s8 + $0xf0] sm:$0xff] }
 0x2e0   :  { %3214 = vmatmul.mubr.msk.f32.vlgmr.msra.gmra.mrb[6].mxu0 %vm441_vm6, %v521_v44 }
 0x2e1   :  { %698 = vmatpush1.bf16.msra.mxu0 %v3465_v43  ;;  %729 = vmatprep.mubr.bf16.mxu0 %v3632_v61  ;;  %v769_v43 = vld [vmem:[%s4736_s8 + $0xf8] sm:$0xff] }
 0x2e2   :  { %699 = vmatprep.subr.bf16.mxu0 %v3470_v45  ;;  %3279 = vmatpush3.bf16.msra.mxu1 %v3278_v23  ;;  %v3292_v44 = vpack.c.bf16 %v769_v43, %v768_v42 }
 0x2e3   :  { %3281 = vmatprep.subr.bf16.mxu1 %v3280_v26 }
 0x2e5   :  { %700 = vmatpush1.bf16.msra.mxu0 %v3468_v46 }
 0x2e6   :  { %701 = vmatprep.subr.bf16.mxu0 %v3473_v47  ;;  %3283 = vmatpush3.bf16.msra.mxu1 %v3282_v29 }
 0x2e7   :  { %3285 = vmatprep.subr.bf16.mxu1 %v3284_v32 }
 0x2e9   :  { %702 = vmatpush1.bf16.msra.mxu0 %v3471_v48 }
 0x2ea   :  { %703 = vmatprep.subr.bf16.mxu0 %v3476_v49  ;;  %3287 = vmatpush3.bf16.msra.mxu1 %v3286_v35 }
 0x2eb   :  { %3289 = vmatprep.subr.bf16.mxu1 %v3288_v38 }
 0x2ed   :  { %704 = vmatpush1.bf16.msra.mxu0 %v3474_v50 }
 0x2ee   :  { %705 = vmatprep.subr.bf16.mxu0 %v3479_v51  ;;  %3291 = vmatpush3.bf16.msra.mxu1 %v3290_v41 }
 0x2ef   :  { %3293 = vmatprep.subr.bf16.mxu1 %v3292_v44 }
 0x2f1   :  { %706 = vmatpush1.bf16.msra.mxu0 %v3477_v52 }
 0x2f2   :  { %707 = vmatprep.subr.bf16.mxu0 %v3482_v54 }
 0x2f5   :  { %708 = vmatpush1.bf16.msra.mxu0 %v3480_v53 }
 0x2f6   :  { %709 = vmatprep.subr.bf16.mxu0 %v3485_v56  ;;  %v753_v56 = vld [vmem:[%s4736_s8 + $0x78] sm:$0xff] }
 0x2f9   :  { %710 = vmatpush1.bf16.msra.mxu0 %v3483_v57 }
 0x2fa   :  { %711 = vmatprep.subr.bf16.mxu0 %v3488_v58 }
 0x2fd   :  { %712 = vmatpush1.bf16.msra.mxu0 %v3486_v60 }
 0x2fe   :  { %3297 = vmatprep.subr.bf16.mxu0 %v3264_v2  ;;  %v4045_v2 = vld [vmem:[%s4737_s9] sm:$0xff] }
 0x2ff   :  { %v942_v3 = vcombine.high %v4045_v2, %v4045_v2 }
 0x3ab   :  { %v511_v45 = vpop.f32.mrb[4].mxu0 }
 0x3ac   :  { %v518_v46 = vrot.slane %v511_v45, %v3840_v59  ;;  %v3210_v47 = vpop.f32.mrb[5].mxu0 }
 0x3ae   :  { %v519_v48 = vmul.f32 %v518_v46, %v3860_v8  ;;  %v752_v8 = vld [vmem:[%s4736_s8 + $0x70] sm:$0xff] }
 0x3af   :  { %v3294_v57 = vpack.c.bf16 %v753_v56, %v752_v8 }
 0x3b1   :  { %3295 = vmatpush3.bf16.msra.mxu1 %v3294_v57 }
 0x3b2   :  { %2705 = vmatprep.subr.msk.mxu1 %vm63_vm0, %v942_v3 }
 0x3b3   :  { %v590_v49 = vpop.f32.mrb[6].mxu0 }
 0x3b4   :  { %v597_v50 = vrot.slane %v590_v49, %v3840_v59  ;;  %v3215_v51 = vpop.f32.mrb[7].mxu0 }
 0x3b6   :  { %v598_v52 = vadd.f32 %v597_v50, %v519_v48 }
 0x3b8   :  { %v599_v53 = vmax.f32 %v598_v52, 0.0 }
 0x3ba   :  { %v600_v54 = vpack.c.bf16 %v599_v53, %v599_v53 }
 0x3bc   :  { %730 = vmatmul.mubr.bf16.vlgmr.msra.gmra.mrb[8].mxu0 %v600_v54  ;;  %v931_v54 = vld [vmem:[%s4739_s10] sm:$0x3] }
 0x3bd   :  { %3299 = vmatpush3.bf16.msra.mxu0 %v3942_v6  ;;  %v3499_v6 = vld [vmem:[%s4738_s11 + $0x28] ss:$16 sps:$4 sm:$0xff]  }
 0x3be   :  { %3301 = vmatprep.subr.bf16.mxu0 %v3944_v9  ;;  %v3501_v9 = vld [vmem:[%s4738_s11 + $0x2c] ss:$16 sps:$4 sm:$0xff]  }
 0x3c1   :  { %3303 = vmatpush3.bf16.msra.mxu0 %v3270_v12  ;;  %v3513_v12 = vld [vmem:[%s4738_s11 + $0x6c] ss:$16 sps:$4 sm:$0xff]  }
 0x3c2   :  { %3305 = vmatprep.subr.bf16.mxu0 %v3272_v14  ;;  %v3517_v14 = vld [vmem:[%s4738_s11 + $0x88] ss:$16 sps:$4 sm:$0xff]  }
 0x3c5   :  { %3307 = vmatpush3.bf16.msra.mxu0 %v3274_v17  ;;  %v3531_v17 = vld [vmem:[%s4738_s11 + $0xcc] ss:$16 sps:$4 sm:$0xff]  }
 0x3c6   :  { %3309 = vmatprep.subr.bf16.mxu0 %v3276_v20  ;;  %v3535_v20 = vld [vmem:[%s4738_s11 + $0xe8] ss:$16 sps:$4 sm:$0xff]  }
 0x3c9   :  { %3311 = vmatpush3.bf16.msra.mxu0 %v3278_v23  ;;  %v3549_v23 = vld [vmem:[%s4738_s11 + $0x12c] ss:$16 sps:$4 sm:$0xff]  }
 0x3ca   :  { %3313 = vmatprep.subr.bf16.mxu0 %v3280_v26  ;;  %v3553_v26 = vld [vmem:[%s4738_s11 + $0x148] ss:$16 sps:$4 sm:$0xff]  }
 0x3cd   :  { %3315 = vmatpush3.bf16.msra.mxu0 %v3282_v29 }
 0x3ce   :  { %3317 = vmatprep.subr.bf16.mxu0 %v3284_v32 }
 0x3d1   :  { %3319 = vmatpush3.bf16.msra.mxu0 %v3286_v35 }
 0x3d2   :  { %3321 = vmatprep.subr.bf16.mxu0 %v3288_v38 }
 0x3d5   :  { %3323 = vmatpush3.bf16.msra.mxu0 %v3290_v41 }
 0x3d6   :  { %3325 = vmatprep.subr.bf16.mxu0 %v3292_v44 }
 0x3d9   :  { %3327 = vmatpush3.bf16.msra.mxu0 %v3294_v57  ;;  %v3492_v57 = vld [vmem:[%s4738_s11 + $0x4] ss:$16 sps:$4 sm:$0xff]  }
 0x3da   :  { %1545 = vmatprep.subr.bf16.mxu0 %v3495_v5  ;;  %v3504_v5 = vld [vmem:[%s4738_s11 + $0x44] ss:$16 sps:$4 sm:$0xff]  }
 0x48f   :  { %v4031_v58 = vpop.f32.mrb[8].mxu0 }
 0x490   :  { %v4033_v60 = vpop.f32.mrb[9].mxu0  ;;  %v840_v63 = vmul.f32 %v4031_v58, %v4031_v58 }
 0x491   :  { %v841_v61 = vmul.f32 %v4033_v60, %v4033_v60  ;;  %v735_v62 = vpop.f32.mrb[10].mxu0  ;;  %834 = vmatprep.mubr.f32.mxu1 %v4033_v60 }
 0x492   :  { %v736_v1 = vpop.f32.mrb[11].mxu0  ;;  %835 = vmatmul.mubr.f32.vlgmr.msra.gmra.mrb[6].mxu1 %v4031_v58 }
 0x493   :  { %906 = vmatprep.mubr.f32.mxu0 %v841_v61  ;;  %1014 = vmatprep.mubr.f32.mxu1 %v3629_v0  ;;  %v3490_v1 = vld [vmem:[%s4738_s11] ss:$16 sps:$4 sm:$0xff]  }
 0x494   :  { %907 = vmatmul.mubr.f32.vlgmr.msra.gmra.mrb[12].mxu0 %v840_v63  ;;  %2706 = vmatpush1.msk.msra.mxu1 %vm63_vm0, %v4045_v2 }
 0x495   :  { %2708 = vmatprep.subr.msk.mxu1 %vm63_vm0, %v942_v3  ;;  %1546 = vmatpush1.bf16.msra.mxu0 %v3493_v4  ;;  %v3498_v4 = vld [vmem:[%s4738_s11 + $0x24] ss:$16 sps:$4 sm:$0xff]  }
 0x496   :  { %1547 = vmatprep.subr.bf16.mxu0 %v3501_v9  ;;  %v3510_v9 = vld [vmem:[%s4738_s11 + $0x64] ss:$16 sps:$4 sm:$0xff]  }
 0x499   :  { %1548 = vmatpush1.bf16.msra.mxu0 %v3499_v6  ;;  %v3502_v6 = vld [vmem:[%s4738_s11 + $0x40] ss:$16 sps:$4 sm:$0xff]  }
 0x49a   :  { %1549 = vmatprep.subr.bf16.mxu0 %v3507_v10  ;;  %v3508_v10 = vld [vmem:[%s4738_s11 + $0x60] ss:$16 sps:$4 sm:$0xff]  }
 0x49d   :  { %1550 = vmatpush1.bf16.msra.mxu0 %v3505_v11  ;;  %v3516_v11 = vld [vmem:[%s4738_s11 + $0x84] ss:$16 sps:$4 sm:$0xff]  }
 0x49e   :  { %1551 = vmatprep.subr.bf16.mxu0 %v3513_v12  ;;  %v3514_v12 = vld [vmem:[%s4738_s11 + $0x80] ss:$16 sps:$4 sm:$0xff]  }
 0x4a1   :  { %1552 = vmatpush1.bf16.msra.mxu0 %v3511_v13  ;;  %v3522_v13 = vld [vmem:[%s4738_s11 + $0xa4] ss:$16 sps:$4 sm:$0xff]  }
 0x4a2   :  { %1553 = vmatprep.subr.bf16.mxu0 %v3519_v7  ;;  %v3520_v7 = vld [vmem:[%s4738_s11 + $0xa0] ss:$16 sps:$4 sm:$0xff]  }
 0x4a5   :  { %1554 = vmatpush1.bf16.msra.mxu0 %v3517_v14  ;;  %v3528_v14 = vld [vmem:[%s4738_s11 + $0xc4] ss:$16 sps:$4 sm:$0xff]  }
 0x4a6   :  { %1555 = vmatprep.subr.bf16.mxu0 %v3525_v15  ;;  %v3526_v15 = vld [vmem:[%s4738_s11 + $0xc0] ss:$16 sps:$4 sm:$0xff]  }
 0x4a9   :  { %1556 = vmatpush1.bf16.msra.mxu0 %v3523_v16  ;;  %v3534_v16 = vld [vmem:[%s4738_s11 + $0xe4] ss:$16 sps:$4 sm:$0xff]  }
 0x4aa   :  { %1557 = vmatprep.subr.bf16.mxu0 %v3531_v17  ;;  %v3532_v17 = vld [vmem:[%s4738_s11 + $0xe0] ss:$16 sps:$4 sm:$0xff]  }
 0x4ad   :  { %1558 = vmatpush1.bf16.msra.mxu0 %v3529_v18  ;;  %v3540_v18 = vld [vmem:[%s4738_s11 + $0x104] ss:$16 sps:$4 sm:$0xff]  }
 0x4ae   :  { %1559 = vmatprep.subr.bf16.mxu0 %v3537_v19  ;;  %v3538_v19 = vld [vmem:[%s4738_s11 + $0x100] ss:$16 sps:$4 sm:$0xff]  }
 0x4b1   :  { %1560 = vmatpush1.bf16.msra.mxu0 %v3535_v20  ;;  %v3546_v20 = vld [vmem:[%s4738_s11 + $0x124] ss:$16 sps:$4 sm:$0xff]  }
 0x4b2   :  { %1561 = vmatprep.subr.bf16.mxu0 %v3543_v21  ;;  %v3544_v21 = vld [vmem:[%s4738_s11 + $0x120] ss:$16 sps:$4 sm:$0xff]  }
 0x4b5   :  { %1562 = vmatpush1.bf16.msra.mxu0 %v3541_v22  ;;  %v3552_v22 = vld [vmem:[%s4738_s11 + $0x144] ss:$16 sps:$4 sm:$0xff]  }
 0x4b6   :  { %1563 = vmatprep.subr.bf16.mxu0 %v3549_v23  ;;  %v3550_v23 = vld [vmem:[%s4738_s11 + $0x140] ss:$16 sps:$4 sm:$0xff]  }
 0x4b9   :  { %1564 = vmatpush1.bf16.msra.mxu0 %v3547_v24  ;;  %v3558_v24 = vld [vmem:[%s4738_s11 + $0x164] ss:$16 sps:$4 sm:$0xff]  }
 0x4ba   :  { %1565 = vmatprep.subr.bf16.mxu0 %v3555_v25  ;;  %v3556_v25 = vld [vmem:[%s4738_s11 + $0x160] ss:$16 sps:$4 sm:$0xff]  }
 0x4bd   :  { %1566 = vmatpush1.bf16.msra.mxu0 %v3553_v26  ;;  %v3564_v26 = vld [vmem:[%s4738_s11 + $0x184] ss:$16 sps:$4 sm:$0xff]  }
 0x4be   :  { %1567 = vmatprep.subr.bf16.mxu0 %v3561_v27  ;;  %v3567_v27 = vld [vmem:[%s4738_s11 + $0x18c] ss:$16 sps:$4 sm:$0xff]  }
 0x4c1   :  { %1568 = vmatpush1.bf16.msra.mxu0 %v3559_v28  ;;  %v3562_v28 = vld [vmem:[%s4738_s11 + $0x180] ss:$16 sps:$4 sm:$0xff]  }
 0x4c2   :  { %1569 = vmatprep.subr.bf16.mxu0 %v3567_v27 }
 0x565   :  { %v2897_v29 = vpop.f32.mrb[6].mxu1 }
 0x566   :  { %v2898_v30 = vpop.f32.mrb[7].mxu1 }
 0x567   :  { %v2899_v31 = vadd.f32 %v2898_v30, %v2897_v29  ;;  %v2932_v32 = vpop.f32.mrb[12].mxu0  ;;  %v3565_v29 = vld [vmem:[%s4738_s11 + $0x188] ss:$16 sps:$4 sm:$0xff]   ;;  %v3568_v30 = vld [vmem:[%s4738_s11 + $0x1a0] ss:$16 sps:$4 sm:$0xff]  }
 0x568   :  { %v2933_v33 = vpop.f32.mrb[13].mxu0  ;;  %1570 = vmatpush1.bf16.msra.mxu0 %v3565_v29  ;;  %v1622_v29 = vld [vmem:[%s4740_s12 + $0x120] sm:$0xff] }
 0x569   :  { %v913_v34 = vsel %vm912_vm7, %v2899_v31, 0.0  ;;  %v2934_v35 = vadd.f32 %v2933_v33, %v2932_v32  ;;  %v3570_v31 = vld [vmem:[%s4738_s11 + $0x1a4] ss:$16 sps:$4 sm:$0xff]   ;;  %v3571_v32 = vld [vmem:[%s4738_s11 + $0x1a8] ss:$16 sps:$4 sm:$0xff]  }
 0x56a   :  { %v914_v36 = vrot.slane %v913_v34, 4  ;;  %v3573_v33 = vld [vmem:[%s4738_s11 + $0x1ac] ss:$16 sps:$4 sm:$0xff]  }
 0x56b   :  { %v921_v37 = vsel %vm912_vm7, %v2934_v35, 0.0  ;;  %1571 = vmatprep.subr.bf16.mxu0 %v3573_v33  ;;  %v3579_v35 = vld [vmem:[%s4738_s11 + $0x1cc] ss:$16 sps:$4 sm:$0xff]   ;;  %v1640_v33 = vld [vmem:[%s4740_s12 + $0x1b0] sm:$0xff] }
 0x56c   :  { %v915_v38 = vadd.f32 %v914_v36, %v913_v34  ;;  %v922_v39 = vrot.slane %v921_v37, 4  ;;  %1572 = vmatpush1.bf16.msra.mxu0 %v3571_v32  ;;  %v3576_v34 = vld [vmem:[%s4738_s11 + $0x1c4] ss:$16 sps:$4 sm:$0xff]   ;;  %v3574_v36 = vld [vmem:[%s4738_s11 + $0x1c0] ss:$16 sps:$4 sm:$0xff]   ;;  %v1609_v32 = vld [vmem:[%s4740_s12 + $0xb8] sm:$0xff] }
 0x56d   :  { %1573 = vmatprep.subr.bf16.mxu0 %v3579_v35 }
 0x56e   :  { %v916_v40 = vrot.slane %v915_v38, 2  ;;  %v923_v41 = vadd.f32 %v922_v39, %v921_v37  ;;  %v3577_v37 = vld [vmem:[%s4738_s11 + $0x1c8] ss:$16 sps:$4 sm:$0xff]   ;;  %v3585_v39 = vld [vmem:[%s4738_s11 + $0x1ec] ss:$16 sps:$4 sm:$0xff]  }
 0x570   :  { %v917_v42 = vadd.f32 %v916_v40, %v915_v38  ;;  %v924_v43 = vrot.slane %v923_v41, 2  ;;  %1574 = vmatpush1.bf16.msra.mxu0 %v3577_v37  ;;  %v3582_v38 = vld [vmem:[%s4738_s11 + $0x1e4] ss:$16 sps:$4 sm:$0xff]   ;;  %v3580_v40 = vld [vmem:[%s4738_s11 + $0x1e0] ss:$16 sps:$4 sm:$0xff]  }
 0x571   :  { %1575 = vmatprep.subr.bf16.mxu0 %v3585_v39  ;;  %v1592_v37 = vld [vmem:[%s4740_s12 + $0x30] sm:$0xff] }
 0x572   :  { %v918_v44 = vrot.slane %v917_v42, 1  ;;  %v925_v45 = vadd.f32 %v924_v43, %v923_v41  ;;  %v3583_v41 = vld [vmem:[%s4738_s11 + $0x1e8] ss:$16 sps:$4 sm:$0xff]  }
 0x573   :  { %v1603_v43 = vld [vmem:[%s4740_s12 + $0x88] sm:$0xff] }
 0x574   :  { %v919_v46 = vadd.f32 %v918_v44, %v917_v42  ;;  %v926_v47 = vrot.slane %v925_v45, 1  ;;  %1576 = vmatpush1.bf16.msra.mxu0 %v3583_v41  ;;  %v1602_v42 = vld [vmem:[%s4740_s12 + $0x80] sm:$0xff]  ;;  %v1624_v41 = vld [vmem:[%s4740_s12 + $0x130] sm:$0xff] }
 0x575   :  { %v1634_v44 = vld [vmem:[%s4740_s12 + $0x180] sm:$0xff] }
 0x576   :  { %v920_v48 = vmul.f32 0.0078125, %v919_v46  ;;  %v927_v49 = vadd.f32 %v926_v47, %v925_v45  ;;  %v4262_v45 = vpack.c.bf16 %v1603_v43, %v1602_v42  ;;  %v1635_v46 = vld [vmem:[%s4740_s12 + $0x188] sm:$0xff]  ;;  %v1625_v42 = vld [vmem:[%s4740_s12 + $0x138] sm:$0xff]  ;;  %v1610_v43 = vld [vmem:[%s4740_s12 + $0xc0] sm:$0xff] }
 0x577   :  { %v4267_v47 = vpack.c.bf16 %v1635_v46, %v1634_v44  ;;  %v1611_v44 = vld [vmem:[%s4740_s12 + $0xc8] sm:$0xff]  ;;  %v1642_v46 = vld [vmem:[%s4740_s12 + $0x1c0] sm:$0xff] }
 0x578   :  { %v929_v50 = vmul.f32 %v920_v48, %v920_v48  ;;  %v928_v51 = vmul.f32 0.0078125, %v927_v49 }
 0x579   :  { %3361 = vmatprep.subr.bf16.mxu0 %v4267_v47 }
 0x57a   :  { %v930_v52 = vsub.f32 %v928_v51, %v929_v50 }
 0x57c   :  { %v932_v53 = vadd.f32 1e-05, %v930_v52 }
 0x57e   :  { %3623 = vrsqrt.f32 %v932_v53 }
 0x588   :  { %v3624_v8 = vpop.eup %3623 }
 0x589   :  { %v934_v56 = vmul.f32 %v3624_v8, %v931_v54 }
 0x58b   :  { %v935_v61 = vmul.f32 %v934_v56, %v920_v48  ;;  %2707 = vmatmul.mubr.msk.f32.vlgmr.msra.gmra.mrb[8].mxu1 %vm59_vm1, %v934_v56 }
 0x58c   :  { %2709 = vmatpush1.msk.msra.mxu1 %vm63_vm0, %v4045_v2  ;;  %1099 = vmatprep.mubr.f32.mxu1 %v3629_v0  ;;  %v3496_v2 = vld [vmem:[%s4738_s11 + $0x20] ss:$16 sps:$4 sm:$0xff]  }
 0x58d   :  { %v937_v62 = vrot.slane %v935_v61, 7  ;;  %1504 = vmatprep.subr.bf16.mxu1 %v3492_v57 }
 0x58f   :  { %v939_v63 = vsub.f32 %v931_v54, %v937_v62 }
 0x591   :  { %v1032_v3 = vrot.slane %v939_v63, 1  ;;  %v1586_v63 = vld [vmem:[%s4740_s12] sm:$0xff] }
 0x593   :  { %2710 = vmatmul.mubr.msk.f32.vlgmr.msra.gmra.mrb[10].mxu1 %vm59_vm1, %v1032_v3 }
 0x594   :  { %1505 = vmatpush1.bf16.msra.mxu1 %v3490_v1  ;;  %v1587_v1 = vld [vmem:[%s4740_s12 + $0x8] sm:$0xff] }
 0x595   :  { %1506 = vmatprep.subr.bf16.mxu1 %v3498_v4  ;;  %v1604_v4 = vld [vmem:[%s4740_s12 + $0x90] sm:$0xff] }
 0x598   :  { %1507 = vmatpush1.bf16.msra.mxu1 %v3496_v2 }
 0x599   :  { %1508 = vmatprep.subr.bf16.mxu1 %v3504_v5  ;;  %v1605_v5 = vld [vmem:[%s4740_s12 + $0x98] sm:$0xff] }
 0x59c   :  { %1509 = vmatpush1.bf16.msra.mxu1 %v3502_v6  ;;  %v1636_v6 = vld [vmem:[%s4740_s12 + $0x190] sm:$0xff] }
 0x59d   :  { %1510 = vmatprep.subr.bf16.mxu1 %v3510_v9  ;;  %v1637_v9 = vld [vmem:[%s4740_s12 + $0x198] sm:$0xff] }
 0x5a0   :  { %1511 = vmatpush1.bf16.msra.mxu1 %v3508_v10 }
 0x5a1   :  { %1512 = vmatprep.subr.bf16.mxu1 %v3516_v11  ;;  %v4301_v11 = vpack.c.bf16 %v1587_v1, %v1586_v63  ;;  %v1645_v63 = vld [vmem:[%s4740_s12 + $0x1d8] sm:$0xff] }
 0x5a4   :  { %1513 = vmatpush1.bf16.msra.mxu1 %v3514_v12 }
 0x5a5   :  { %1514 = vmatprep.subr.bf16.mxu1 %v3522_v13  ;;  %v1588_v13 = vld [vmem:[%s4740_s12 + $0x10] sm:$0xff] }
 0x5a8   :  { %1515 = vmatpush1.bf16.msra.mxu1 %v3520_v7  ;;  %v1589_v7 = vld [vmem:[%s4740_s12 + $0x18] sm:$0xff] }
 0x5a9   :  { %1516 = vmatprep.subr.bf16.mxu1 %v3528_v14 }
 0x5ac   :  { %1517 = vmatpush1.bf16.msra.mxu1 %v3526_v15  ;;  %v4311_v15 = vpack.c.bf16 %v1605_v5, %v1604_v4  ;;  %v1628_v5 = vld [vmem:[%s4740_s12 + $0x150] sm:$0xff] }
 0x5ad   :  { %1518 = vmatprep.subr.bf16.mxu1 %v3534_v16  ;;  %v4313_v16 = vpack.c.bf16 %v1637_v9, %v1636_v6  ;;  %v1629_v6 = vld [vmem:[%s4740_s12 + $0x158] sm:$0xff]  ;;  %v1614_v9 = vld [vmem:[%s4740_s12 + $0xe0] sm:$0xff] }
 0x5b0   :  { %1519 = vmatpush1.bf16.msra.mxu1 %v3532_v17  ;;  %v1620_v17 = vld [vmem:[%s4740_s12 + $0x110] sm:$0xff] }
 0x5b1   :  { %1520 = vmatprep.subr.bf16.mxu1 %v3540_v18  ;;  %v1621_v18 = vld [vmem:[%s4740_s12 + $0x118] sm:$0xff] }
 0x5b4   :  { %1521 = vmatpush1.bf16.msra.mxu1 %v3538_v19  ;;  %v1606_v19 = vld [vmem:[%s4740_s12 + $0xa0] sm:$0xff] }
 0x5b5   :  { %1522 = vmatprep.subr.bf16.mxu1 %v3546_v20  ;;  %v1607_v20 = vld [vmem:[%s4740_s12 + $0xa8] sm:$0xff] }
 0x5b6   :  { %v4347_v27 = vpack.c.bf16 %v1607_v20, %v1606_v19  ;;  %v1599_v19 = vld [vmem:[%s4740_s12 + $0x68] sm:$0xff] }
 0x5b8   :  { %1523 = vmatpush1.bf16.msra.mxu1 %v3544_v21  ;;  %v1638_v21 = vld [vmem:[%s4740_s12 + $0x1a0] sm:$0xff] }
 0x5b9   :  { %1524 = vmatprep.subr.bf16.mxu1 %v3552_v22  ;;  %v1639_v22 = vld [vmem:[%s4740_s12 + $0x1a8] sm:$0xff] }
 0x5bc   :  { %1525 = vmatpush1.bf16.msra.mxu1 %v3550_v23  ;;  %v4335_v23 = vpack.c.bf16 %v1589_v7, %v1588_v13  ;;  %v1646_v13 = vld [vmem:[%s4740_s12 + $0x1e0] sm:$0xff]  ;;  %v1647_v7 = vld [vmem:[%s4740_s12 + $0x1e8] sm:$0xff] }
 0x5bd   :  { %1526 = vmatprep.subr.bf16.mxu1 %v3558_v24  ;;  %v4337_v24 = vpack.c.bf16 %v1621_v18, %v1620_v17  ;;  %v4481_v17 = vpack.c.bf16 %v1629_v6, %v1628_v5  ;;  %v1598_v18 = vld [vmem:[%s4740_s12 + $0x60] sm:$0xff] }
 0x5c0   :  { %1527 = vmatpush1.bf16.msra.mxu1 %v3556_v25  ;;  %v1590_v25 = vld [vmem:[%s4740_s12 + $0x20] sm:$0xff] }
 0x5c1   :  { %1528 = vmatprep.subr.bf16.mxu1 %v3564_v26  ;;  %v1591_v26 = vld [vmem:[%s4740_s12 + $0x28] sm:$0xff] }
 0x5c2   :  { %v4371_v35 = vpack.c.bf16 %v1591_v26, %v1590_v25  ;;  %v1631_v25 = vld [vmem:[%s4740_s12 + $0x168] sm:$0xff]  ;;  %v1616_v26 = vld [vmem:[%s4740_s12 + $0xf0] sm:$0xff] }
 0x5c4   :  { %1529 = vmatpush1.bf16.msra.mxu1 %v3562_v28  ;;  %v4349_v28 = vpack.c.bf16 %v1639_v22, %v1638_v21  ;;  %v4493_v21 = vpack.c.bf16 %v1647_v7, %v1646_v13  ;;  %v1630_v22 = vld [vmem:[%s4740_s12 + $0x160] sm:$0xff] }
 0x5c5   :  { %1530 = vmatprep.subr.bf16.mxu1 %v3570_v31  ;;  %v1608_v31 = vld [vmem:[%s4740_s12 + $0xb0] sm:$0xff] }
 0x5c6   :  { %v4383_v39 = vpack.c.bf16 %v1609_v32, %v1608_v31  ;;  %v1649_v31 = vld [vmem:[%s4740_s12 + $0x1f8] sm:$0xff]  ;;  %v3354_v32 = vpack.c.bf16 %v1599_v19, %v1598_v18 }
 0x5c8   :  { %1531 = vmatpush1.bf16.msra.mxu1 %v3568_v30  ;;  %v1623_v30 = vld [vmem:[%s4740_s12 + $0x128] sm:$0xff] }
 0x5c9   :  { %1532 = vmatprep.subr.bf16.mxu1 %v3576_v34  ;;  %v1641_v34 = vld [vmem:[%s4740_s12 + $0x1b8] sm:$0xff] }
 0x5cc   :  { %1533 = vmatpush1.bf16.msra.mxu1 %v3574_v36  ;;  %v4373_v36 = vpack.c.bf16 %v1623_v30, %v1622_v29  ;;  %v1617_v29 = vld [vmem:[%s4740_s12 + $0xf8] sm:$0xff]  ;;  %v1648_v30 = vld [vmem:[%s4740_s12 + $0x1f0] sm:$0xff] }
 0x5cd   :  { %1534 = vmatprep.subr.bf16.mxu1 %v3582_v38  ;;  %v1593_v38 = vld [vmem:[%s4740_s12 + $0x38] sm:$0xff] }
 0x5d0   :  { %1535 = vmatpush1.bf16.msra.mxu1 %v3580_v40  ;;  %v4385_v40 = vpack.c.bf16 %v1641_v34, %v1640_v33  ;;  %v3386_v33 = vpack.c.bf16 %v1631_v25, %v1630_v22  ;;  %v1600_v34 = vld [vmem:[%s4740_s12 + $0x70] sm:$0xff] }
 0x5d1   :  { %3329 = vmatprep.subr.bf16.mxu1 %v4262_v45 }
 0x65e   :  { %v1016_v48 = vpop.f32.mrb[8].mxu1 }
 0x65f   :  { %v1024_v49 = vrot.slane %v1016_v48, %v3840_v59  ;;  %v1018_v50 = vpop.f32.mrb[9].mxu1  ;;  %v1643_v48 = vld [vmem:[%s4740_s12 + $0x1c8] sm:$0xff] }
 0x660   :  { %v1028_v51 = vrot.slane %v1018_v50, %v3840_v59  ;;  %v4409_v50 = vpack.c.bf16 %v1625_v42, %v1624_v41  ;;  %v1601_v41 = vld [vmem:[%s4740_s12 + $0x78] sm:$0xff]  ;;  %v1632_v42 = vld [vmem:[%s4740_s12 + $0x170] sm:$0xff] }
 0x661   :  { %v1029_v52 = vmul.f32 %v1024_v49, %v4031_v58  ;;  %v1618_v58 = vld [vmem:[%s4740_s12 + $0x100] sm:$0xff]  ;;  %v4407_v49 = vpack.c.bf16 %v1593_v38, %v1592_v37  ;;  %v3356_v37 = vpack.c.bf16 %v1617_v29, %v1616_v26  ;;  %v3388_v38 = vpack.c.bf16 %v1649_v31, %v1648_v30 }
 0x662   :  { %v1030_v53 = vmul.f32 %v1028_v51, %v4033_v60  ;;  %v1619_v60 = vld [vmem:[%s4740_s12 + $0x108] sm:$0xff]  ;;  %v1594_v51 = vld [vmem:[%s4740_s12 + $0x40] sm:$0xff] }
 0x663   :  { %v4303_v12 = vpack.c.bf16 %v1619_v60, %v1618_v58  ;;  %v1596_v58 = vld [vmem:[%s4740_s12 + $0x50] sm:$0xff]  ;;  %v1597_v60 = vld [vmem:[%s4740_s12 + $0x58] sm:$0xff] }
 0x666   :  { %v1101_v54 = vpop.f32.mrb[10].mxu1 }
 0x667   :  { %v1109_v8 = vrot.slane %v1101_v54, %v3840_v59  ;;  %v1103_v56 = vpop.f32.mrb[11].mxu1  ;;  %v4421_v54 = vpack.c.bf16 %v1643_v48, %v1642_v46 }
 0x668   :  { %v1113_v57 = vrot.slane %v1103_v56, %v3840_v59  ;;  %v1627_v56 = vld [vmem:[%s4740_s12 + $0x148] sm:$0xff] }
 0x669   :  { %v1114_v61 = vadd.f32 %v1109_v8, %v1029_v52  ;;  %v1595_v52 = vld [vmem:[%s4740_s12 + $0x48] sm:$0xff]  ;;  %v1626_v8 = vld [vmem:[%s4740_s12 + $0x140] sm:$0xff] }
 0x66a   :  { %v1115_v62 = vadd.f32 %v1113_v57, %v1030_v53  ;;  %v4419_v53 = vpack.c.bf16 %v1611_v44, %v1610_v43  ;;  %v1612_v57 = vld [vmem:[%s4740_s12 + $0xd0] sm:$0xff]  ;;  %v4443_v1 = vpack.c.bf16 %v1595_v52, %v1594_v51  ;;  %v1633_v43 = vld [vmem:[%s4740_s12 + $0x178] sm:$0xff]  ;;  %v3358_v44 = vpack.c.bf16 %v1601_v41, %v1600_v34 }
 0x66b   :  { %v1116_v3 = vmax.f32 %v1114_v61, 0.0  ;;  %v1613_v61 = vld [vmem:[%s4740_s12 + $0xd8] sm:$0xff]  ;;  %v3390_v46 = vpack.c.bf16 %v1633_v43, %v1632_v42 }
 0x66c   :  { %v1117_v2 = vmax.f32 %v1115_v62, 0.0  ;;  %v1644_v62 = vld [vmem:[%s4740_s12 + $0x1d0] sm:$0xff]  ;;  %v4455_v4 = vpack.c.bf16 %v1613_v61, %v1612_v57 }
 0x66d   :  { %v1118_v14 = vpack.c.bf16 %v1116_v3, %v1116_v3  ;;  %v4445_v3 = vpack.c.bf16 %v1627_v56, %v1626_v8 }
 0x66e   :  { %v1119_v10 = vpack.c.bf16 %v1117_v2, %v1117_v2  ;;  %v4457_v2 = vpack.c.bf16 %v1645_v63, %v1644_v62 }
 0x670   :  { %1536 = vmatprep.mubr.bf16.mxu1 %v1119_v10  ;;  %1577 = vmatprep.mubr.bf16.mxu0 %v1119_v10  ;;  %v1615_v10 = vld [vmem:[%s4740_s12 + $0xe8] sm:$0xff] }
 0x671   :  { %1537 = vmatmul.mubr.bf16.vlgmr.msra.gmra.mrb[12].mxu1 %v1118_v14  ;;  %1578 = vmatmul.mubr.bf16.vlgmr.msra.gmra.mrb[16].mxu0 %v1118_v14  ;;  %v4479_v14 = vpack.c.bf16 %v1597_v60, %v1596_v58  ;;  %v4491_v20 = vpack.c.bf16 %v1615_v10, %v1614_v9 }
 0x672   :  { %3331 = vmatpush3.bf16.msra.mxu1 %v4301_v11  ;;  %3363 = vmatpush3.bf16.msra.mxu0 %v4303_v12 }
 0x673   :  { %3333 = vmatprep.subr.bf16.mxu1 %v4311_v15  ;;  %3365 = vmatprep.subr.bf16.mxu0 %v4313_v16 }
 0x676   :  { %3335 = vmatpush3.bf16.msra.mxu1 %v4335_v23  ;;  %3367 = vmatpush3.bf16.msra.mxu0 %v4337_v24 }
 0x677   :  { %3337 = vmatprep.subr.bf16.mxu1 %v4347_v27  ;;  %3369 = vmatprep.subr.bf16.mxu0 %v4349_v28 }
 0x67a   :  { %3339 = vmatpush3.bf16.msra.mxu1 %v4371_v35  ;;  %3371 = vmatpush3.bf16.msra.mxu0 %v4373_v36 }
 0x67b   :  { %3341 = vmatprep.subr.bf16.mxu1 %v4383_v39  ;;  %3373 = vmatprep.subr.bf16.mxu0 %v4385_v40 }
 0x67e   :  { %3343 = vmatpush3.bf16.msra.mxu1 %v4407_v49  ;;  %3375 = vmatpush3.bf16.msra.mxu0 %v4409_v50 }
 0x67f   :  { %3345 = vmatprep.subr.bf16.mxu1 %v4419_v53  ;;  %3377 = vmatprep.subr.bf16.mxu0 %v4421_v54 }
 0x682   :  { %3347 = vmatpush3.bf16.msra.mxu1 %v4443_v1  ;;  %3379 = vmatpush3.bf16.msra.mxu0 %v4445_v3 }
 0x683   :  { %3349 = vmatprep.subr.bf16.mxu1 %v4455_v4  ;;  %3381 = vmatprep.subr.bf16.mxu0 %v4457_v2 }
 0x686   :  { %3351 = vmatpush3.bf16.msra.mxu1 %v4479_v14  ;;  %3383 = vmatpush3.bf16.msra.mxu0 %v4481_v17 }
 0x687   :  { %3353 = vmatprep.subr.bf16.mxu1 %v4491_v20  ;;  %3385 = vmatprep.subr.bf16.mxu0 %v4493_v21 }
 0x68a   :  { %3355 = vmatpush3.bf16.msra.mxu1 %v3354_v32  ;;  %3387 = vmatpush3.bf16.msra.mxu0 %v3386_v33 }
 0x68b   :  { %3357 = vmatprep.subr.bf16.mxu1 %v3356_v37  ;;  %3389 = vmatprep.subr.bf16.mxu0 %v3388_v38 }
 0x68e   :  { %3359 = vmatpush3.bf16.msra.mxu1 %v3358_v44  ;;  %3391 = vmatpush3.bf16.msra.mxu0 %v3390_v46 }
 0x68f   :  { %3393 = vmatprep.subr.bf16.mxu1 %v4262_v45  ;;  %3425 = vmatprep.subr.bf16.mxu0 %v4267_v47 }
 0x744   :  { %v4531_v48 = vpop.f32.mrb[12].mxu1  ;;  %v4533_v51 = vpop.f32.mrb[16].mxu0 }
 0x745   :  { %v4535_v52 = vpop.f32.mrb[13].mxu1  ;;  %v4537_v8 = vpop.f32.mrb[17].mxu0 }
 0x746   :  { %v1791_v56 = vmul.f32 %v4535_v52, %v4535_v52  ;;  %v1793_v57 = vmul.f32 %v4537_v8, %v4537_v8  ;;  %v1542_v61 = vpop.f32.mrb[14].mxu1  ;;  %v1583_v62 = vpop.f32.mrb[18].mxu0  ;;  %1714 = vmatprep.mubr.f32.mxu1 %v4535_v52  ;;  %1784 = vmatprep.mubr.f32.mxu0 %v4537_v8 }
 0x747   :  { %v1543_v45 = vpop.f32.mrb[15].mxu1  ;;  %v1584_v47 = vpop.f32.mrb[19].mxu0  ;;  %1715 = vmatmul.mubr.f32.vlgmr.msra.gmra.mrb[16].mxu1 %v4531_v48  ;;  %1785 = vmatmul.mubr.f32.vlgmr.msra.gmra.mrb[14].mxu0 %v4533_v51 }
 0x748   :  { %3395 = vmatpush3.bf16.msra.mxu1 %v4301_v11  ;;  %3427 = vmatpush3.bf16.msra.mxu0 %v4303_v12  ;;  %v1790_v11 = vmul.f32 %v4531_v48, %v4531_v48  ;;  %v1792_v12 = vmul.f32 %v4533_v51, %v4533_v51  ;;  %v3587_v47 = vld [vmem:[%s4742_s15 + $0x40] sm:$0xff]  }
 0x749   :  { %1858 = vmatprep.mubr.f32.mxu1 %v1791_v56  ;;  %1928 = vmatprep.mubr.f32.mxu0 %v1793_v57 }
 0x74a   :  { %3397 = vmatprep.subr.bf16.mxu1 %v4311_v15  ;;  %3429 = vmatprep.subr.bf16.mxu0 %v4313_v16  ;;  %v3633_v15 = vmov 1983009808  }
 0x74b   :  { %v1966_v16 = vunpack.c.l.s4 %v3633_v15  ;;  %v3591_v15 = vld [vmem:[%s4742_s15 + $0x8] sm:$0xff]  }
 0x74c   :  { %3399 = vmatpush3.bf16.msra.mxu1 %v4335_v23  ;;  %3431 = vmatpush3.bf16.msra.mxu0 %v4337_v24  ;;  %v1962_v23 = vld [vmem:[%s4741_s13] sm:$0xff] }
 0x74d   :  { %3401 = vmatprep.subr.bf16.mxu1 %v4347_v27  ;;  %3433 = vmatprep.subr.bf16.mxu0 %v4349_v28  ;;  %v1967_v24 = vunpack.c.0.s8 %v1966_v16  ;;  %v1964_v27 = vcombine.high %v1962_v23, %v1962_v23  ;;  %v3595_v16 = vld [vmem:[%s4742_s15 + $0x10] sm:$0xff]  }
 0x74f   :  { %v1970_v28 = vsub.s32 %v1967_v24, %v3834_v55  ;;  %v3590_v55 = vld [vmem:[%s4742_s15 + $0xc0] sm:$0xff]   ;;  %v3599_v24 = vld [vmem:[%s4742_s15 + $0x18] sm:$0xff]  }
 0x750   :  { %3403 = vmatpush3.bf16.msra.mxu1 %v4371_v35  ;;  %3435 = vmatpush3.bf16.msra.mxu0 %v4373_v36 }
 0x751   :  { %3405 = vmatprep.subr.bf16.mxu1 %v4383_v39  ;;  %3437 = vmatprep.subr.bf16.mxu0 %v4385_v40  ;;  %v4580_v35 = vrot.slane %v1962_v23, %v1970_v28  ;;  %v4582_v36 = vrot.slane %v1964_v27, %v1970_v28  ;;  %v3597_v23 = vld [vmem:[%s4742_s15 + $0x58] sm:$0xff]   ;;  %v3600_v27 = vld [vmem:[%s4742_s15 + $0x90] sm:$0xff]   ;;  %v3601_v28 = vld [vmem:[%s4742_s15 + $0x60] sm:$0xff]  }
 0x753   :  { %v1979_v39 = vcombine.high %v4580_v35, %v4580_v35  ;;  %v4588_v40 = vcombine.high %v4582_v36, %v4582_v36 }
 0x754   :  { %3407 = vmatpush3.bf16.msra.mxu1 %v4407_v49  ;;  %3439 = vmatpush3.bf16.msra.mxu0 %v4409_v50  ;;  %v3592_v49 = vld [vmem:[%s4742_s15 + $0x80] sm:$0xff]   ;;  %v3594_v50 = vld [vmem:[%s4742_s15 + $0xc8] sm:$0xff]  }
 0x755   :  { %3409 = vmatprep.subr.bf16.mxu1 %v4419_v53  ;;  %3441 = vmatprep.subr.bf16.mxu0 %v4421_v54  ;;  %v3596_v53 = vld [vmem:[%s4742_s15 + $0x88] sm:$0xff]   ;;  %v3598_v54 = vld [vmem:[%s4742_s15 + $0xd0] sm:$0xff]  }
 0x758   :  { %3411 = vmatpush3.bf16.msra.mxu1 %v4443_v1  ;;  %3443 = vmatpush3.bf16.msra.mxu0 %v4445_v3 }
 0x759   :  { %3413 = vmatprep.subr.bf16.mxu1 %v4455_v4  ;;  %3445 = vmatprep.subr.bf16.mxu0 %v4457_v2 }
 0x75c   :  { %3415 = vmatpush3.bf16.msra.mxu1 %v4479_v14  ;;  %3447 = vmatpush3.bf16.msra.mxu0 %v4481_v17 }
 0x75d   :  { %3417 = vmatprep.subr.bf16.mxu1 %v4491_v20  ;;  %3449 = vmatprep.subr.bf16.mxu0 %v4493_v21 }
 0x760   :  { %3419 = vmatpush3.bf16.msra.mxu1 %v3354_v32  ;;  %3451 = vmatpush3.bf16.msra.mxu0 %v3386_v33 }
 0x761   :  { %3421 = vmatprep.subr.bf16.mxu1 %v3356_v37  ;;  %3453 = vmatprep.subr.bf16.mxu0 %v3388_v38 }
 0x764   :  { %3423 = vmatpush3.bf16.msra.mxu1 %v3358_v44  ;;  %3455 = vmatpush3.bf16.msra.mxu0 %v3390_v46  ;;  %v1953_v44 = vld [vmem:[%s4743_s14] sm:$0x3] }
 0x765   :  { %2775 = vmatprep.subr.msk.mxu1 %vm1985_vm8, %v1979_v39  ;;  %3097 = vmatprep.subr.bf16.mxu0 %v3590_v55  ;;  %v3606_v55 = vld [vmem:[%s4742_s15 + $0xe0] sm:$0xff]  }
 0x767   :  { %1859 = vmatmul.mubr.f32.vlgmr.msra.gmra.mrb[18].mxu1 %v1790_v11  ;;  %1929 = vmatmul.mubr.f32.vlgmr.msra.gmra.mrb[20].mxu0 %v1792_v12  ;;  %v3588_v11 = vld [vmem:[%s4742_s15] sm:$0xff]   ;;  %v3589_v12 = vld [vmem:[%s4742_s15 + $0x48] sm:$0xff]  }
 0x768   :  { %2058 = vmatprep.mubr.f32.mxu1 %v3629_v0  ;;  %2776 = vmatpush1.msk.msra.mxu1 %vm1985_vm8, %v4580_v35 }
 0x769   :  { %2778 = vmatprep.subr.msk.mxu1 %vm1985_vm8, %v4588_v40  ;;  %3098 = vmatpush3.bf16.msra.mxu0 %v3592_v49  ;;  %v3607_v49 = vld [vmem:[%s4742_s15 + $0x28] sm:$0xff]  }
 0x76a   :  { %3099 = vmatprep.subr.bf16.mxu0 %v3594_v50  ;;  %v3608_v50 = vld [vmem:[%s4742_s15 + $0xa0] sm:$0xff]  }
 0x76d   :  { %3100 = vmatpush3.bf16.msra.mxu0 %v3596_v53  ;;  %v3609_v53 = vld [vmem:[%s4742_s15 + $0x70] sm:$0xff]  }
 0x76e   :  { %3101 = vmatprep.subr.bf16.mxu0 %v3598_v54  ;;  %v3610_v54 = vld [vmem:[%s4742_s15 + $0xe8] sm:$0xff]  }
 0x771   :  { %3102 = vmatpush3.bf16.msra.mxu0 %v3600_v27 }
 0x81a   :  { %v2967_v63 = vpop.f32.mrb[16].mxu1  ;;  %v3002_v1 = vpop.f32.mrb[14].mxu0 }
 0x81b   :  { %v2968_v3 = vpop.f32.mrb[17].mxu1  ;;  %v3003_v58 = vpop.f32.mrb[15].mxu0 }
 0x81c   :  { %v2969_v60 = vadd.f32 %v2968_v3, %v2967_v63  ;;  %v3004_v4 = vadd.f32 %v3003_v58, %v3002_v1  ;;  %v3611_v63 = vld [vmem:[%s4742_s15 + $0x30] sm:$0xff]   ;;  %v3612_v1 = vld [vmem:[%s4742_s15 + $0xa8] sm:$0xff]   ;;  %v3613_v3 = vld [vmem:[%s4742_s15 + $0x78] sm:$0xff]  }
 0x81d   :  { %v3614_v58 = vld [vmem:[%s4742_s15 + $0xf0] sm:$0xff]  }
 0x81e   :  { %v1787_v2 = vadd.f32 %v3004_v4, %v2969_v60  ;;  %v3615_v60 = vld [vmem:[%s4742_s15 + $0x38] sm:$0xff]   ;;  %v3616_v4 = vld [vmem:[%s4742_s15 + $0xb0] sm:$0xff]  }
 0x820   :  { %v1935_v5 = vsel %vm1934_vm9, %v1787_v2, 0.0  ;;  %v3617_v2 = vld [vmem:[%s4742_s15 + $0xf8] sm:$0xff]  }
 0x821   :  { %v1936_v6 = vrot.slane %v1935_v5, 4 }
 0x823   :  { %v1937_v9 = vadd.f32 %v1936_v6, %v1935_v5  ;;  %v3618_v5 = vld [vmem:[%s4742_s15 + $0xb8] sm:$0xff]  }
 0x825   :  { %v1938_v10 = vrot.slane %v1937_v9, 2 }
 0x827   :  { %v1939_v20 = vadd.f32 %v1938_v10, %v1937_v9 }
 0x829   :  { %v1940_v25 = vrot.slane %v1939_v20, 1 }
 0x82b   :  { %v1941_v30 = vadd.f32 %v1940_v25, %v1939_v20 }
 0x82d   :  { %v1942_v33 = vmul.f32 0.001953125, %v1941_v30 }
 0x82f   :  { %v1951_v38 = vmul.f32 %v1942_v33, %v1942_v33 }
 0x83a   :  { %v3037_v13 = vpop.f32.mrb[18].mxu1  ;;  %v3072_v7 = vpop.f32.mrb[20].mxu0 }
 0x83b   :  { %v3038_v14 = vpop.f32.mrb[19].mxu1  ;;  %v3073_v17 = vpop.f32.mrb[21].mxu0 }
 0x83c   :  { %v3039_v18 = vadd.f32 %v3038_v14, %v3037_v13  ;;  %v3074_v19 = vadd.f32 %v3073_v17, %v3072_v7 }
 0x83e   :  { %v1931_v21 = vadd.f32 %v3074_v19, %v3039_v18 }
 0x840   :  { %v1943_v22 = vsel %vm1934_vm9, %v1931_v21, 0.0 }
 0x841   :  { %v1944_v26 = vrot.slane %v1943_v22, 4 }
 0x843   :  { %v1945_v29 = vadd.f32 %v1944_v26, %v1943_v22 }
 0x845   :  { %v1946_v31 = vrot.slane %v1945_v29, 2 }
 0x847   :  { %v1947_v32 = vadd.f32 %v1946_v31, %v1945_v29 }
 0x849   :  { %v1948_v34 = vrot.slane %v1947_v32, 1 }
 0x84b   :  { %v1949_v37 = vadd.f32 %v1948_v34, %v1947_v32 }
 0x84d   :  { %v1950_v41 = vmul.f32 0.001953125, %v1949_v37 }
 0x84f   :  { %v1952_v42 = vsub.f32 %v1950_v41, %v1951_v38 }
 0x851   :  { %v1954_v43 = vadd.f32 1e-05, %v1952_v42 }
 0x853   :  { %3625 = vrsqrt.f32 %v1954_v43 }
 0x85d   :  { %v3626_v46 = vpop.eup %3625 }
 0x85e   :  { %v1956_v56 = vmul.f32 %v3626_v46, %v1953_v44 }
 0x860   :  { %2777 = vmatmul.mubr.msk.f32.vlgmr.msra.gmra.mrb[20].mxu1 %vm1981_vm10, %v1956_v56  ;;  %v1957_v57 = vmul.f32 %v1956_v56, %v1942_v33 }
 0x861   :  { %2779 = vmatpush1.msk.msra.mxu1 %vm1985_vm8, %v4582_v36  ;;  %2129 = vmatprep.mubr.f32.mxu1 %v3629_v0 }
 0x862   :  { %2781 = vmatprep.subr.msk.mxu1 %vm1985_vm8, %v1979_v39  ;;  %v1959_v61 = vrot.slane %v1957_v57, 7  ;;  %v3604_v39 = vld [vmem:[%s4742_s15 + $0x98] sm:$0xff]  }
 0x864   :  { %2780 = vmatmul.mubr.msk.f32.vlgmr.msra.gmra.mrb[22].mxu1 %vm1981_vm10, %v1956_v56  ;;  %v1961_v62 = vsub.f32 %v1953_v44, %v1959_v61 }
 0x865   :  { %2782 = vmatpush1.msk.msra.mxu1 %vm1985_vm8, %v4580_v35  ;;  %2224 = vmatprep.mubr.f32.mxu1 %v3629_v0  ;;  %v3602_v35 = vld [vmem:[%s4742_s15 + $0xd8] sm:$0xff]  }
 0x866   :  { %2784 = vmatprep.subr.msk.mxu1 %vm1985_vm8, %v4588_v40  ;;  %v2157_v45 = vrot.slane %v1961_v62, 1  ;;  %3103 = vmatprep.subr.bf16.mxu0 %v3602_v35  ;;  %v3605_v40 = vld [vmem:[%s4742_s15 + $0x68] sm:$0xff]  }
 0x867   :  { %3104 = vmatpush3.bf16.msra.mxu0 %v3604_v39 }
 0x868   :  { %2783 = vmatmul.mubr.msk.f32.vlgmr.msra.gmra.mrb[24].mxu1 %vm1981_vm10, %v2157_v45  ;;  %3105 = vmatprep.subr.bf16.mxu0 %v3606_v55 }
 0x869   :  { %2785 = vmatpush1.msk.msra.mxu1 %vm1985_vm8, %v4582_v36  ;;  %2295 = vmatprep.mubr.f32.mxu1 %v3629_v0  ;;  %v3593_v0 = vld [vmem:[%s4742_s15 + $0x50] sm:$0xff]   ;;  %v3603_v36 = vld [vmem:[%s4742_s15 + $0x20] sm:$0xff]  }
 0x86a   :  { %3075 = vmatprep.subr.bf16.mxu1 %v3587_v47 }
 0x86b   :  { %3106 = vmatpush3.bf16.msra.mxu0 %v3608_v50 }
 0x86c   :  { %2786 = vmatmul.mubr.msk.f32.vlgmr.msra.gmra.mrb[26].mxu1 %vm1981_vm10, %v2157_v45  ;;  %3107 = vmatprep.subr.bf16.mxu0 %v3610_v54 }
 0x86d   :  { %3076 = vmatpush3.bf16.msra.mxu1 %v3588_v11 }
 0x86e   :  { %3077 = vmatprep.subr.bf16.mxu1 %v3589_v12 }
 0x86f   :  { %3108 = vmatpush3.bf16.msra.mxu0 %v3612_v1 }
 0x870   :  { %3109 = vmatprep.subr.bf16.mxu0 %v3614_v58 }
 0x871   :  { %3078 = vmatpush3.bf16.msra.mxu1 %v3591_v15 }
 0x872   :  { %3079 = vmatprep.subr.bf16.mxu1 %v3593_v0 }
 0x873   :  { %3110 = vmatpush3.bf16.msra.mxu0 %v3616_v4 }
 0x874   :  { %3111 = vmatprep.subr.bf16.mxu0 %v3617_v2 }
 0x875   :  { %3080 = vmatpush3.bf16.msra.mxu1 %v3595_v16 }
 0x876   :  { %3081 = vmatprep.subr.bf16.mxu1 %v3597_v23 }
 0x877   :  { %3112 = vmatpush3.bf16.msra.mxu0 %v3618_v5 }
 0x879   :  { %3082 = vmatpush3.bf16.msra.mxu1 %v3599_v24 }
 0x87a   :  { %3083 = vmatprep.subr.bf16.mxu1 %v3601_v28 }
 0x87d   :  { %3084 = vmatpush3.bf16.msra.mxu1 %v3603_v36 }
 0x87e   :  { %3085 = vmatprep.subr.bf16.mxu1 %v3605_v40 }
 0x881   :  { %3086 = vmatpush3.bf16.msra.mxu1 %v3607_v49 }
 0x882   :  { %3087 = vmatprep.subr.bf16.mxu1 %v3609_v53 }
 0x885   :  { %3088 = vmatpush3.bf16.msra.mxu1 %v3611_v63 }
 0x886   :  { %3089 = vmatprep.subr.bf16.mxu1 %v3613_v3 }
 0x889   :  { %3090 = vmatpush3.bf16.msra.mxu1 %v3615_v60 }
 0x933   :  { %v2060_v6 = vpop.f32.mrb[20].mxu1 }
 0x934   :  { %v2139_v9 = vrot.slane %v2060_v6, %v3840_v59  ;;  %v2062_v10 = vpop.f32.mrb[21].mxu1 }
 0x935   :  { %v2143_v13 = vrot.slane %v2062_v10, %v3840_v59 }
 0x936   :  { %v2152_v7 = vmul.f32 %v2139_v9, %v4531_v48 }
 0x937   :  { %v2153_v14 = vmul.f32 %v2143_v13, %v4535_v52  ;;  %v2131_v17 = vpop.f32.mrb[22].mxu1 }
 0x938   :  { %v2147_v18 = vrot.slane %v2131_v17, %v3840_v59  ;;  %v2133_v19 = vpop.f32.mrb[23].mxu1 }
 0x939   :  { %v2151_v20 = vrot.slane %v2133_v19, %v3840_v59 }
 0x93a   :  { %v2154_v21 = vmul.f32 %v2147_v18, %v4533_v51 }
 0x93b   :  { %v2155_v22 = vmul.f32 %v2151_v20, %v4537_v8  ;;  %v2226_v25 = vpop.f32.mrb[24].mxu1 }
 0x93c   :  { %v2305_v26 = vrot.slane %v2226_v25, %v3840_v59  ;;  %v2228_v29 = vpop.f32.mrb[25].mxu1 }
 0x93d   :  { %v2309_v30 = vrot.slane %v2228_v29, %v3840_v59 }
 0x93e   :  { %v2318_v31 = vadd.f32 %v2305_v26, %v2152_v7 }
 0x93f   :  { %v2319_v48 = vadd.f32 %v2309_v30, %v2153_v14  ;;  %v2297_v32 = vpop.f32.mrb[26].mxu1 }
 0x940   :  { %v2322_v52 = vmax.f32 %v2318_v31, 0.0  ;;  %v2313_v33 = vrot.slane %v2297_v32, %v3840_v59  ;;  %v2299_v34 = vpop.f32.mrb[27].mxu1 }
 0x941   :  { %v2323_v37 = vmax.f32 %v2319_v48, 0.0  ;;  %v2317_v38 = vrot.slane %v2299_v34, %v3840_v59  ;;  %v2787_v59 = vld [vmem:[%s4744_s16] ss:$0 sm:$0xff] }
 0x942   :  { %v2320_v41 = vadd.f32 %v2313_v33, %v2154_v21  ;;  %v2326_v8 = vpack.c.bf16 %v2322_v52, %v2322_v52 }
 0x943   :  { %v2327_v51 = vpack.c.bf16 %v2323_v37, %v2323_v37  ;;  %v2321_v42 = vadd.f32 %v2317_v38, %v2155_v22 }
 0x944   :  { %v2324_v43 = vmax.f32 %v2320_v41, 0.0 }
 0x945   :  { %v2325_v44 = vmax.f32 %v2321_v42, 0.0  ;;  %2625 = vmatprep.mubr.bf16.mxu1 %v2327_v51 }
 0x946   :  { %2626 = vmatmul.mubr.bf16.vlgmr.msra.gmra.mrb[28].mxu1 %v2326_v8  ;;  %v2328_v56 = vpack.c.bf16 %v2324_v43, %v2324_v43 }
 0x947   :  { %v2329_v46 = vpack.c.bf16 %v2325_v44, %v2325_v44 }
 0x949   :  { %2665 = vmatprep.mubr.bf16.mxu0 %v2329_v46 }
 0x94a   :  { %2666 = vmatmul.mubr.bf16.vlgmr.msra.gmra.mrb[24].mxu0 %v2328_v56 }
 0xa19   :  { %v3091_v57 = vpop.f32.mrb[28].mxu1 }
 0xa1a   :  { %v3092_v61 = vpop.f32.mrb[29].mxu1 }
 0xa1b   :  { %v3093_v62 = vadd.f32 %v3092_v61, %v3091_v57  ;;  %v3094_v45 = vpop.f32.mrb[30].mxu1 }
 0xa1c   :  { %v3095_v47 = vpop.f32.mrb[31].mxu1 }
 0xa1d   :  { %v3113_v11 = vpop.f32.mrb[24].mxu0  ;;  %v2628_v15 = vadd.f32 %v3093_v62, %v2787_v59 }
 0xa1e   :  { %v3114_v12 = vpop.f32.mrb[25].mxu0 }
 0xa1f   :  { %v3115_v0 = vadd.f32 %v3114_v12, %v3113_v11  ;;  %v3116_v16 = vpop.f32.mrb[26].mxu0 }
 0xa20   :  { %v3117_v23 = vpop.f32.mrb[27].mxu0 }
 0xa21   :  { %v2668_v24 = vadd.f32 %v3115_v0, %v2628_v15 }
 0xa23   :  { %3627 = vtanh.f32 %v2668_v24 }
 0xa2d   :  { %v3628_v27 = vpop.eup %3627 }
 0xa2e   :  { %2675 = vst.msk [vmem:[%s4745_s17] sm:$0x3] %vm2674_vm11, %v3628_v27 }

</bundles_post_ra>
